<compile_context>
chip_gen: v7x
topology: tpu7x:2x2x1
jax: 0.10.0
libtpu: 0.0.40
codegen_flags: <defaults>
</compile_context>

<pallas_src>
import functools

import jax
import jax.numpy as jnp
from jax.experimental import pallas as pl
from jax.experimental.pallas import tpu as pltpu

_P = 4  # four fused 3x3 convolutions -> 4-pixel halo on each side


def _round_up(x, m):
    return -(-x // m) * m


# --------------------------------------------------------------------------
# Kernel
# --------------------------------------------------------------------------
def _rec_block_kernel(x_ref, m_ref, w1, w2, w3, w4, b1, b2, b3, b4, alpha_ref,
                      o_ref, *, wbuf, tile_h, pad):
    """One (batch, row-strip) grid step: 4 fused conv3x3 + PReLU layers."""
    x = x_ref[...]        # (Cin_p, Npix)  f32, flattened strip pixels on lanes
    mask = m_ref[...]     # (1,     Npix)  1.0 inside the image, 0.0 outside

    def conv_prelu(v, w_ref, b_ref, layer_idx, apply_mask):
        # 9 taps = static lane rolls of the row-major flattened padded strip.
        taps = []
        for ky in range(3):
            for kx in range(3):
                off = (ky - 1) * wbuf + (kx - 1)
                taps.append(v if off == 0 else jnp.roll(v, -off, axis=1))
        v_cat = jnp.concatenate(taps, axis=0)                      # (9*C, Npix)
        acc = jnp.dot(w_ref[...], v_cat,
                      preferred_element_type=jnp.float32)          # (Cout, Npix)
        acc = acc + b_ref[...]                                     # (Cout, 1) bcast
        a = alpha_ref[layer_idx]                                   # SMEM scalar
        y = jnp.where(acc >= 0.0, acc, a * acc)                    # PReLU
        if apply_mask:
            # Re-zero outside-image positions so fused valid convs over the
            # halo reproduce per-layer 'SAME' zero padding exactly.
            y = y * mask
        return y

    y = conv_prelu(x, w1, b1, 0, True)
    y = conv_prelu(y, w2, b2, 1, True)
    y = conv_prelu(y, w3, b3, 2, True)
    y = conv_prelu(y, w4, b4, 3, False)        # only core rows are consumed

    # Lane-dense store of the core rows (halo rows dropped here, halo columns
    # dropped in the wrapper).
    o_ref[...] = y[:, pad * wbuf:(pad + tile_h) * wbuf].astype(o_ref.dtype)


# --------------------------------------------------------------------------
# Tiling / VMEM budgeting
# --------------------------------------------------------------------------
def _vmem_capacity_bytes():
    try:
        return int(pltpu.get_tpu_info().vmem_capacity_bytes)
    except Exception:
        return 64 * 2**20        # assume the smallest (v7x per-core) if unknown


def _strip_vmem_bytes(tile_h, width, cin_p, mid_p, out_c, pad):
    """Conservative per-step VMEM working set (f32, lane/sublane padded)."""
    wbuf = width + 2 * pad
    npix = _round_up((tile_h + 2 * pad) * wbuf, 128)
    npix_out = _round_up(tile_h * wbuf, 128)
    cmax = max(cin_p, mid_p)
    in_blk = 2 * cin_p * npix * 4                      # double-buffered input
    mask_blk = 2 * 8 * npix * 4                        # double-buffered mask
    out_blk = 2 * _round_up(out_c, 8) * npix_out * 4   # double-buffered output
    w_blk = 2 * 4 * mid_p * _round_up(9 * cmax, 128) * 4
    temps = 22 * cmax * npix * 4                       # im2col + concat + acc
    return in_blk + mask_blk + out_blk + w_blk + temps


def _pick_tile_h(height, width, cin_p, mid_p, out_c, pad, capacity):
    budget = min(int(0.35 * capacity), 40 * 2**20)
    h_cap = min(_round_up(height, 8), 512)
    best = None
    th = 8
    while th <= h_cap:
        if _strip_vmem_bytes(th, width, cin_p, mid_p, out_c, pad) <= budget:
            best = th
        th += 8
    if best is None:
        # TODO(synk): add width (W) tiling for very wide images instead of failing.
        raise ValueError(
            f"Row strip for W={width} does not fit the VMEM budget ({budget} B); "
            "width tiling would be required.")
    return best


# --------------------------------------------------------------------------
# Wrapper
# --------------------------------------------------------------------------
def rec_block_forward_pallas(x_nchw, mask, params):
    """Fused Pallas forward of Rec_block.  x_nchw: (N, Cin, H, W); mask unused."""
    del mask  # unused in the reference forward; kept for signature parity

    x = x_nchw.astype(jnp.float32)
    n, cin, h, width = x.shape
    mid_c = params[0][0].shape[-1]
    out_c = params[3][0].shape[-1]
    pad = _P
    cin_p = _round_up(cin, 8)          # channel pad -> aligned sublane concat
    mid_p = _round_up(mid_c, 8)
    wbuf = width + 2 * pad

    capacity = _vmem_capacity_bytes()
    tile_h = _pick_tile_h(h, width, cin_p, mid_p, out_c, pad, capacity)
    n_strips = -(-h // tile_h)
    if n * n_strips < 2 and h > 8:     # keep both TensorCores busy on v7x
        tile_h = _round_up(-(-h // 2), 8)
        n_strips = -(-h // tile_h)
    h_core = n_strips * tile_h
    hbuf = tile_h + 2 * pad
    npix = hbuf * wbuf

    # ---- layout prep (plain XLA ops) -------------------------------------
    # Zero 'SAME' padding + H rounded up to whole strips + channel pad to 8.
    xp = jnp.pad(x, ((0, 0), (0, cin_p - cin),
                     (pad, h_core - h + pad), (pad, pad)))
    # Overlapping halo strips, pre-materialized so BlockSpec pipelining
    # double-buffers the HBM->VMEM copies.
    strips = jnp.stack([xp[:, :, i * tile_h:i * tile_h + hbuf, :]
                        for i in range(n_strips)], axis=1)
    x_in = strips.reshape(n, n_strips, cin_p, npix)

    # Inside-image mask per strip (precomputed once, reused for all layers).
    g_rows = (jnp.arange(n_strips)[:, None] * tile_h
              + jnp.arange(hbuf)[None, :] - pad)                  # (nS, hbuf)
    in_rows = (g_rows >= 0) & (g_rows < h)
    g_cols = jnp.arange(wbuf) - pad
    in_cols = (g_cols >= 0) & (g_cols < width)
    strip_mask = (in_rows[:, :, None] & in_cols[None, None, :]).astype(jnp.float32)
    strip_mask = strip_mask.reshape(n_strips, 1, npix)

    # Weights -> (Cout_p, 9*Cin_p) matching tap order ky*3+kx; biases -> (Cout_p, 1).
    def prep_w(w_hwio, ci_pad, co_pad):
        ci, co = w_hwio.shape[2], w_hwio.shape[3]
        wt = jnp.transpose(w_hwio.astype(jnp.float32), (3, 0, 1, 2))  # (co,ky,kx,ci)
        wt = jnp.pad(wt, ((0, co_pad - co), (0, 0), (0, 0), (0, ci_pad - ci)))
        return wt.reshape(co_pad, 9 * ci_pad)

    def prep_b(b, co_pad):
        b = b.astype(jnp.float32).reshape(-1)
        return jnp.pad(b, (0, co_pad - b.shape[0])).reshape(co_pad, 1)

    io_pads = [(cin_p, mid_p), (mid_p, mid_p), (mid_p, mid_p), (mid_p, out_c)]
    w_list = [prep_w(p[0], ci, co) for p, (ci, co) in zip(params, io_pads)]
    b_list = [prep_b(p[1], co) for p, (_, co) in zip(params, io_pads)]
    alphas = jnp.stack([jnp.asarray(p[2], jnp.float32).reshape(()) for p in params])

    # ---- pallas_call ------------------------------------------------------
    def const_spec(shape):
        return pl.BlockSpec(shape, lambda bi, si: (0,) * len(shape))

    vmem_est = _strip_vmem_bytes(tile_h, width, cin_p, mid_p, out_c, pad)
    vmem_limit = int(min(max(int(1.25 * vmem_est) + (8 << 20), 16 << 20),
                         int(0.45 * capacity)))

    flops = 2 * n * n_strips * npix * 9 * (cin_p * mid_p + 2 * mid_p * mid_p
                                           + mid_p * out_c)
    bytes_accessed = 4 * (x_in.size + n * strip_mask.size
                          + sum(wi.size for wi in w_list)
                          + sum(bi.size for bi in b_list)
                          + n * n_strips * out_c * tile_h * wbuf)

    out = pl.pallas_call(
        functools.partial(_rec_block_kernel, wbuf=wbuf, tile_h=tile_h, pad=pad),
        out_shape=jax.ShapeDtypeStruct((n, n_strips, out_c, tile_h * wbuf),
                                       jnp.float32),
        grid=(n, n_strips),
        in_specs=[
            pl.BlockSpec((None, None, cin_p, npix),
                         lambda bi, si: (bi, si, 0, 0)),           # input strip
            pl.BlockSpec((None, 1, npix), lambda bi, si: (si, 0, 0)),  # mask
            const_spec(w_list[0].shape), const_spec(w_list[1].shape),
            const_spec(w_list[2].shape), const_spec(w_list[3].shape),
            const_spec(b_list[0].shape), const_spec(b_list[1].shape),
            const_spec(b_list[2].shape), const_spec(b_list[3].shape),
            pl.BlockSpec(memory_space=pltpu.MemorySpace.SMEM),     # PReLU alphas
        ],
        out_specs=pl.BlockSpec((None, None, out_c, tile_h * wbuf),
                               lambda bi, si: (bi, si, 0, 0)),
        compiler_params=pltpu.CompilerParams(
            dimension_semantics=("parallel", "parallel"),
            vmem_limit_bytes=vmem_limit),
        cost_estimate=pl.CostEstimate(flops=int(flops), transcendentals=0,
                                      bytes_accessed=int(bytes_accessed)),
    )(x_in, strip_mask, *w_list, *b_list, alphas)

    # (N, nS, Co, TH*Wbuf) -> NCHW, dropping halo columns and row-tile padding.
    out = out.reshape(n, n_strips, out_c, tile_h, wbuf)
    out = jnp.transpose(out, (0, 2, 1, 3, 4)).reshape(n, out_c, h_core, wbuf)
    return out[:, :, :h, pad:pad + width]


rec_block_forward = jax.jit(rec_block_forward_pallas)


# --------------------------------------------------------------------------
# Parameters + pure-JAX reference
# --------------------------------------------------------------------------
def init_rec_block_params(key, out_c, in_c, mid_c):
    """Deterministic synthetic parameters matching Rec_block.__init__ shapes."""
    chans = [(in_c, mid_c), (mid_c, mid_c), (mid_c, mid_c), (mid_c, out_c)]
    params = []
    for i, (ci, co) in enumerate(chans):
        kw, kb = jax.random.split(jax.random.fold_in(key, i))
        w = 0.05 * jax.random.normal(kw, (3, 3, ci, co), jnp.float32)   # HWIO
        b = 0.05 * jax.random.normal(kb, (co,), jnp.float32)
        alpha = jnp.float32(0.25)    # nn.PReLU() default init
        params.append((w, b, alpha))
    return params


def _reference_forward(x_nchw, params):
    """Pure-JAX reference (lax conv, highest precision) for cross-checking."""
    x = jnp.transpose(x_nchw, (0, 2, 3, 1))
    for (w, b, a) in params:
        y = jax.lax.conv_general_dilated(
            x, w, window_strides=(1, 1), padding="SAME",
            dimension_numbers=("NHWC", "HWIO", "NHWC"),
            precision=jax.lax.Precision.HIGHEST)
        y = y + b
        x = jnp.where(y >= 0.0, y, a * y)
    return jnp.transpose(x, (0, 3, 1, 2))


if __name__ == "__main__":
    key = jax.random.PRNGKey(0)
    k_x, k_m, k_p = jax.random.split(key, 3)

    batch, in_c, mid_c, out_c, height, width = 2, 4, 8, 4, 16, 16
    x = jax.random.normal(k_x, (batch, in_c, height, width), jnp.float32)
    mask = jax.random.normal(k_m, (batch, 1, height, width), jnp.float32)  # unused

    params = init_rec_block_params(k_p, out_c, in_c, mid_c)

    out = rec_block_forward(x, mask, params)
    out = jax.block_until_ready(out)

    ref = _reference_forward(x, params)
    assert out.shape == (batch, out_c, height, width)
    max_err = float(jnp.max(jnp.abs(out - ref)))
    assert jnp.allclose(out, ref, atol=1e-3, rtol=1e-3), f"mismatch vs ref: {max_err}"

    print("KERNEL_OK")
</pallas_src>

<mosaic_0001>
module attributes {stable_mosaic.version = 11 : i64} {
  func.func @_rec_block_kernel(%arg0: i32, %arg1: i32, %arg2: memref<1x1x8x576xf32, #tpu.memory_space<vmem>>, %arg3: memref<1x1x576xf32, #tpu.memory_space<vmem>>, %arg4: memref<8x72xf32, #tpu.memory_space<vmem>>, %arg5: memref<8x72xf32, #tpu.memory_space<vmem>>, %arg6: memref<8x72xf32, #tpu.memory_space<vmem>>, %arg7: memref<4x72xf32, #tpu.memory_space<vmem>>, %arg8: memref<8x1xf32, #tpu.memory_space<vmem>>, %arg9: memref<8x1xf32, #tpu.memory_space<vmem>>, %arg10: memref<8x1xf32, #tpu.memory_space<vmem>>, %arg11: memref<4x1xf32, #tpu.memory_space<vmem>>, %arg12: memref<4xf32, #tpu.memory_space<smem>>, %arg13: memref<1x1x4x384xf32, #tpu.memory_space<vmem>>) attributes {dimension_semantics = [#tpu.dimension_semantics<parallel>, #tpu.dimension_semantics<parallel>], iteration_bounds = array<i64: 2, 1>, scalar_prefetch = 0 : i64, scratch_operands = 0 : i64, tpu.core_type = #tpu.core_type<tc>, window_params = [{transform_indices = @transform_0, window_bounds = array<i64: 1, 1, 8, 576>}, {transform_indices = @transform_1, window_bounds = array<i64: 1, 1, 576>}, {pipeline_mode = #tpu.pipeline_mode<synchronous>, transform_indices = @transform_2, window_bounds = array<i64: 8, 72>}, {pipeline_mode = #tpu.pipeline_mode<synchronous>, transform_indices = @transform_3, window_bounds = array<i64: 8, 72>}, {pipeline_mode = #tpu.pipeline_mode<synchronous>, transform_indices = @transform_4, window_bounds = array<i64: 8, 72>}, {pipeline_mode = #tpu.pipeline_mode<synchronous>, transform_indices = @transform_5, window_bounds = array<i64: 4, 72>}, {pipeline_mode = #tpu.pipeline_mode<synchronous>, transform_indices = @transform_6, window_bounds = array<i64: 8, 1>}, {pipeline_mode = #tpu.pipeline_mode<synchronous>, transform_indices = @transform_7, window_bounds = array<i64: 8, 1>}, {pipeline_mode = #tpu.pipeline_mode<synchronous>, transform_indices = @transform_8, window_bounds = array<i64: 8, 1>}, {pipeline_mode = #tpu.pipeline_mode<synchronous>, transform_indices = @transform_9, window_bounds = array<i64: 4, 1>}, {transform_indices = @transform_10, window_bounds = array<i64: 4>}, {transform_indices = @transform_11, window_bounds = array<i64: 1, 1, 4, 384>}]} {
    %c0 = arith.constant 0 : index
    %c0_0 = arith.constant 0 : index
    %c0_1 = arith.constant 0 : index
    %c0_2 = arith.constant 0 : index
    %0 = vector.load %arg2[%c0, %c0_0, %c0_1, %c0_2] : memref<1x1x8x576xf32, #tpu.memory_space<vmem>>, vector<1x1x8x576xf32>
    %1 = vector.shape_cast %0 : vector<1x1x8x576xf32> to vector<8x576xf32>
    %c0_3 = arith.constant 0 : index
    %c0_4 = arith.constant 0 : index
    %c0_5 = arith.constant 0 : index
    %2 = vector.load %arg3[%c0_3, %c0_4, %c0_5] : memref<1x1x576xf32, #tpu.memory_space<vmem>>, vector<1x1x576xf32>
    %3 = vector.shape_cast %2 : vector<1x1x576xf32> to vector<1x576xf32>
    %4 = vector.extract_strided_slice %1 {offsets = [0, 551], sizes = [8, 25], strides = [1, 1]} : vector<8x576xf32> to vector<8x25xf32>
    %5 = vector.extract_strided_slice %1 {offsets = [0, 0], sizes = [8, 551], strides = [1, 1]} : vector<8x576xf32> to vector<8x551xf32>
    %6 = tpu.concatenate %4, %5 in 1 : vector<8x25xf32>, vector<8x551xf32> -> vector<8x576xf32>
    %7 = vector.extract_strided_slice %1 {offsets = [0, 552], sizes = [8, 24], strides = [1, 1]} : vector<8x576xf32> to vector<8x24xf32>
    %8 = vector.extract_strided_slice %1 {offsets = [0, 0], sizes = [8, 552], strides = [1, 1]} : vector<8x576xf32> to vector<8x552xf32>
    %9 = tpu.concatenate %7, %8 in 1 : vector<8x24xf32>, vector<8x552xf32> -> vector<8x576xf32>
    %10 = vector.extract_strided_slice %1 {offsets = [0, 553], sizes = [8, 23], strides = [1, 1]} : vector<8x576xf32> to vector<8x23xf32>
    %11 = vector.extract_strided_slice %1 {offsets = [0, 0], sizes = [8, 553], strides = [1, 1]} : vector<8x576xf32> to vector<8x553xf32>
    %12 = tpu.concatenate %10, %11 in 1 : vector<8x23xf32>, vector<8x553xf32> -> vector<8x576xf32>
    %13 = vector.extract_strided_slice %1 {offsets = [0, 575], sizes = [8, 1], strides = [1, 1]} : vector<8x576xf32> to vector<8x1xf32>
    %14 = vector.extract_strided_slice %1 {offsets = [0, 0], sizes = [8, 575], strides = [1, 1]} : vector<8x576xf32> to vector<8x575xf32>
    %15 = tpu.concatenate %13, %14 in 1 : vector<8x1xf32>, vector<8x575xf32> -> vector<8x576xf32>
    %16 = vector.extract_strided_slice %1 {offsets = [0, 1], sizes = [8, 575], strides = [1, 1]} : vector<8x576xf32> to vector<8x575xf32>
    %17 = vector.extract_strided_slice %1 {offsets = [0, 0], sizes = [8, 1], strides = [1, 1]} : vector<8x576xf32> to vector<8x1xf32>
    %18 = tpu.concatenate %16, %17 in 1 : vector<8x575xf32>, vector<8x1xf32> -> vector<8x576xf32>
    %19 = vector.extract_strided_slice %1 {offsets = [0, 23], sizes = [8, 553], strides = [1, 1]} : vector<8x576xf32> to vector<8x553xf32>
    %20 = vector.extract_strided_slice %1 {offsets = [0, 0], sizes = [8, 23], strides = [1, 1]} : vector<8x576xf32> to vector<8x23xf32>
    %21 = tpu.concatenate %19, %20 in 1 : vector<8x553xf32>, vector<8x23xf32> -> vector<8x576xf32>
    %22 = vector.extract_strided_slice %1 {offsets = [0, 24], sizes = [8, 552], strides = [1, 1]} : vector<8x576xf32> to vector<8x552xf32>
    %23 = vector.extract_strided_slice %1 {offsets = [0, 0], sizes = [8, 24], strides = [1, 1]} : vector<8x576xf32> to vector<8x24xf32>
    %24 = tpu.concatenate %22, %23 in 1 : vector<8x552xf32>, vector<8x24xf32> -> vector<8x576xf32>
    %25 = vector.extract_strided_slice %1 {offsets = [0, 25], sizes = [8, 551], strides = [1, 1]} : vector<8x576xf32> to vector<8x551xf32>
    %26 = vector.extract_strided_slice %1 {offsets = [0, 0], sizes = [8, 25], strides = [1, 1]} : vector<8x576xf32> to vector<8x25xf32>
    %27 = tpu.concatenate %25, %26 in 1 : vector<8x551xf32>, vector<8x25xf32> -> vector<8x576xf32>
    %28 = tpu.concatenate %6, %9, %12, %15, %1, %18, %21, %24, %27 in 0 : vector<8x576xf32>, vector<8x576xf32>, vector<8x576xf32>, vector<8x576xf32>, vector<8x576xf32>, vector<8x576xf32>, vector<8x576xf32>, vector<8x576xf32>, vector<8x576xf32> -> vector<72x576xf32>
    %c0_6 = arith.constant 0 : index
    %c0_7 = arith.constant 0 : index
    %29 = vector.load %arg4[%c0_6, %c0_7] : memref<8x72xf32, #tpu.memory_space<vmem>>, vector<8x72xf32>
    %cst = arith.constant dense<0.000000e+00> : vector<8x576xf32>
    %30 = tpu.matmul %29, %28, %cst {dimension_numbers = #tpu.dot_dimension_numbers<[1], [0], [0], [1], [0, 0, 1, 1], [], []>} : vector<8x72xf32>, vector<72x576xf32>, vector<8x576xf32> -> vector<8x576xf32>
    %c0_8 = arith.constant 0 : index
    %c0_9 = arith.constant 0 : index
    %31 = vector.load %arg8[%c0_8, %c0_9] : memref<8x1xf32, #tpu.memory_space<vmem>>, vector<8x1xf32>
    %32 = vector.broadcast %31 : vector<8x1xf32> to vector<8x576xf32>
    %33 = arith.addf %30, %32 : vector<8x576xf32>
    %c0_10 = arith.constant 0 : index
    %34 = memref.load %arg12[%c0_10] : memref<4xf32, #tpu.memory_space<smem>>
    %cst_11 = arith.constant 0.000000e+00 : f32
    %35 = vector.broadcast %cst_11 : f32 to vector<8x576xf32>
    %36 = arith.cmpf oge, %33, %35 : vector<8x576xf32>
    %37 = vector.broadcast %34 : f32 to vector<8x576xf32>
    %38 = arith.mulf %37, %33 : vector<8x576xf32>
    %39 = arith.select %36, %33, %38 : vector<8x576xi1>, vector<8x576xf32>
    %40 = vector.broadcast %3 : vector<1x576xf32> to vector<8x576xf32>
    %41 = arith.mulf %39, %40 : vector<8x576xf32>
    %42 = vector.extract_strided_slice %41 {offsets = [0, 551], sizes = [8, 25], strides = [1, 1]} : vector<8x576xf32> to vector<8x25xf32>
    %43 = vector.extract_strided_slice %41 {offsets = [0, 0], sizes = [8, 551], strides = [1, 1]} : vector<8x576xf32> to vector<8x551xf32>
    %44 = tpu.concatenate %42, %43 in 1 : vector<8x25xf32>, vector<8x551xf32> -> vector<8x576xf32>
    %45 = vector.extract_strided_slice %41 {offsets = [0, 552], sizes = [8, 24], strides = [1, 1]} : vector<8x576xf32> to vector<8x24xf32>
    %46 = vector.extract_strided_slice %41 {offsets = [0, 0], sizes = [8, 552], strides = [1, 1]} : vector<8x576xf32> to vector<8x552xf32>
    %47 = tpu.concatenate %45, %46 in 1 : vector<8x24xf32>, vector<8x552xf32> -> vector<8x576xf32>
    %48 = vector.extract_strided_slice %41 {offsets = [0, 553], sizes = [8, 23], strides = [1, 1]} : vector<8x576xf32> to vector<8x23xf32>
    %49 = vector.extract_strided_slice %41 {offsets = [0, 0], sizes = [8, 553], strides = [1, 1]} : vector<8x576xf32> to vector<8x553xf32>
    %50 = tpu.concatenate %48, %49 in 1 : vector<8x23xf32>, vector<8x553xf32> -> vector<8x576xf32>
    %51 = vector.extract_strided_slice %41 {offsets = [0, 575], sizes = [8, 1], strides = [1, 1]} : vector<8x576xf32> to vector<8x1xf32>
    %52 = vector.extract_strided_slice %41 {offsets = [0, 0], sizes = [8, 575], strides = [1, 1]} : vector<8x576xf32> to vector<8x575xf32>
    %53 = tpu.concatenate %51, %52 in 1 : vector<8x1xf32>, vector<8x575xf32> -> vector<8x576xf32>
    %54 = vector.extract_strided_slice %41 {offsets = [0, 1], sizes = [8, 575], strides = [1, 1]} : vector<8x576xf32> to vector<8x575xf32>
    %55 = vector.extract_strided_slice %41 {offsets = [0, 0], sizes = [8, 1], strides = [1, 1]} : vector<8x576xf32> to vector<8x1xf32>
    %56 = tpu.concatenate %54, %55 in 1 : vector<8x575xf32>, vector<8x1xf32> -> vector<8x576xf32>
    %57 = vector.extract_strided_slice %41 {offsets = [0, 23], sizes = [8, 553], strides = [1, 1]} : vector<8x576xf32> to vector<8x553xf32>
    %58 = vector.extract_strided_slice %41 {offsets = [0, 0], sizes = [8, 23], strides = [1, 1]} : vector<8x576xf32> to vector<8x23xf32>
    %59 = tpu.concatenate %57, %58 in 1 : vector<8x553xf32>, vector<8x23xf32> -> vector<8x576xf32>
    %60 = vector.extract_strided_slice %41 {offsets = [0, 24], sizes = [8, 552], strides = [1, 1]} : vector<8x576xf32> to vector<8x552xf32>
    %61 = vector.extract_strided_slice %41 {offsets = [0, 0], sizes = [8, 24], strides = [1, 1]} : vector<8x576xf32> to vector<8x24xf32>
    %62 = tpu.concatenate %60, %61 in 1 : vector<8x552xf32>, vector<8x24xf32> -> vector<8x576xf32>
    %63 = vector.extract_strided_slice %41 {offsets = [0, 25], sizes = [8, 551], strides = [1, 1]} : vector<8x576xf32> to vector<8x551xf32>
    %64 = vector.extract_strided_slice %41 {offsets = [0, 0], sizes = [8, 25], strides = [1, 1]} : vector<8x576xf32> to vector<8x25xf32>
    %65 = tpu.concatenate %63, %64 in 1 : vector<8x551xf32>, vector<8x25xf32> -> vector<8x576xf32>
    %66 = tpu.concatenate %44, %47, %50, %53, %41, %56, %59, %62, %65 in 0 : vector<8x576xf32>, vector<8x576xf32>, vector<8x576xf32>, vector<8x576xf32>, vector<8x576xf32>, vector<8x576xf32>, vector<8x576xf32>, vector<8x576xf32>, vector<8x576xf32> -> vector<72x576xf32>
    %c0_12 = arith.constant 0 : index
    %c0_13 = arith.constant 0 : index
    %67 = vector.load %arg5[%c0_12, %c0_13] : memref<8x72xf32, #tpu.memory_space<vmem>>, vector<8x72xf32>
    %cst_14 = arith.constant dense<0.000000e+00> : vector<8x576xf32>
    %68 = tpu.matmul %67, %66, %cst_14 {dimension_numbers = #tpu.dot_dimension_numbers<[1], [0], [0], [1], [0, 0, 1, 1], [], []>} : vector<8x72xf32>, vector<72x576xf32>, vector<8x576xf32> -> vector<8x576xf32>
    %c0_15 = arith.constant 0 : index
    %c0_16 = arith.constant 0 : index
    %69 = vector.load %arg9[%c0_15, %c0_16] : memref<8x1xf32, #tpu.memory_space<vmem>>, vector<8x1xf32>
    %70 = vector.broadcast %69 : vector<8x1xf32> to vector<8x576xf32>
    %71 = arith.addf %68, %70 : vector<8x576xf32>
    %c1 = arith.constant 1 : index
    %72 = memref.load %arg12[%c1] : memref<4xf32, #tpu.memory_space<smem>>
    %cst_17 = arith.constant 0.000000e+00 : f32
    %73 = vector.broadcast %cst_17 : f32 to vector<8x576xf32>
    %74 = arith.cmpf oge, %71, %73 : vector<8x576xf32>
    %75 = vector.broadcast %72 : f32 to vector<8x576xf32>
    %76 = arith.mulf %75, %71 : vector<8x576xf32>
    %77 = arith.select %74, %71, %76 : vector<8x576xi1>, vector<8x576xf32>
    %78 = vector.broadcast %3 : vector<1x576xf32> to vector<8x576xf32>
    %79 = arith.mulf %77, %78 : vector<8x576xf32>
    %80 = vector.extract_strided_slice %79 {offsets = [0, 551], sizes = [8, 25], strides = [1, 1]} : vector<8x576xf32> to vector<8x25xf32>
    %81 = vector.extract_strided_slice %79 {offsets = [0, 0], sizes = [8, 551], strides = [1, 1]} : vector<8x576xf32> to vector<8x551xf32>
    %82 = tpu.concatenate %80, %81 in 1 : vector<8x25xf32>, vector<8x551xf32> -> vector<8x576xf32>
    %83 = vector.extract_strided_slice %79 {offsets = [0, 552], sizes = [8, 24], strides = [1, 1]} : vector<8x576xf32> to vector<8x24xf32>
    %84 = vector.extract_strided_slice %79 {offsets = [0, 0], sizes = [8, 552], strides = [1, 1]} : vector<8x576xf32> to vector<8x552xf32>
    %85 = tpu.concatenate %83, %84 in 1 : vector<8x24xf32>, vector<8x552xf32> -> vector<8x576xf32>
    %86 = vector.extract_strided_slice %79 {offsets = [0, 553], sizes = [8, 23], strides = [1, 1]} : vector<8x576xf32> to vector<8x23xf32>
    %87 = vector.extract_strided_slice %79 {offsets = [0, 0], sizes = [8, 553], strides = [1, 1]} : vector<8x576xf32> to vector<8x553xf32>
    %88 = tpu.concatenate %86, %87 in 1 : vector<8x23xf32>, vector<8x553xf32> -> vector<8x576xf32>
    %89 = vector.extract_strided_slice %79 {offsets = [0, 575], sizes = [8, 1], strides = [1, 1]} : vector<8x576xf32> to vector<8x1xf32>
    %90 = vector.extract_strided_slice %79 {offsets = [0, 0], sizes = [8, 575], strides = [1, 1]} : vector<8x576xf32> to vector<8x575xf32>
    %91 = tpu.concatenate %89, %90 in 1 : vector<8x1xf32>, vector<8x575xf32> -> vector<8x576xf32>
    %92 = vector.extract_strided_slice %79 {offsets = [0, 1], sizes = [8, 575], strides = [1, 1]} : vector<8x576xf32> to vector<8x575xf32>
    %93 = vector.extract_strided_slice %79 {offsets = [0, 0], sizes = [8, 1], strides = [1, 1]} : vector<8x576xf32> to vector<8x1xf32>
    %94 = tpu.concatenate %92, %93 in 1 : vector<8x575xf32>, vector<8x1xf32> -> vector<8x576xf32>
    %95 = vector.extract_strided_slice %79 {offsets = [0, 23], sizes = [8, 553], strides = [1, 1]} : vector<8x576xf32> to vector<8x553xf32>
    %96 = vector.extract_strided_slice %79 {offsets = [0, 0], sizes = [8, 23], strides = [1, 1]} : vector<8x576xf32> to vector<8x23xf32>
    %97 = tpu.concatenate %95, %96 in 1 : vector<8x553xf32>, vector<8x23xf32> -> vector<8x576xf32>
    %98 = vector.extract_strided_slice %79 {offsets = [0, 24], sizes = [8, 552], strides = [1, 1]} : vector<8x576xf32> to vector<8x552xf32>
    %99 = vector.extract_strided_slice %79 {offsets = [0, 0], sizes = [8, 24], strides = [1, 1]} : vector<8x576xf32> to vector<8x24xf32>
    %100 = tpu.concatenate %98, %99 in 1 : vector<8x552xf32>, vector<8x24xf32> -> vector<8x576xf32>
    %101 = vector.extract_strided_slice %79 {offsets = [0, 25], sizes = [8, 551], strides = [1, 1]} : vector<8x576xf32> to vector<8x551xf32>
    %102 = vector.extract_strided_slice %79 {offsets = [0, 0], sizes = [8, 25], strides = [1, 1]} : vector<8x576xf32> to vector<8x25xf32>
    %103 = tpu.concatenate %101, %102 in 1 : vector<8x551xf32>, vector<8x25xf32> -> vector<8x576xf32>
    %104 = tpu.concatenate %82, %85, %88, %91, %79, %94, %97, %100, %103 in 0 : vector<8x576xf32>, vector<8x576xf32>, vector<8x576xf32>, vector<8x576xf32>, vector<8x576xf32>, vector<8x576xf32>, vector<8x576xf32>, vector<8x576xf32>, vector<8x576xf32> -> vector<72x576xf32>
    %c0_18 = arith.constant 0 : index
    %c0_19 = arith.constant 0 : index
    %105 = vector.load %arg6[%c0_18, %c0_19] : memref<8x72xf32, #tpu.memory_space<vmem>>, vector<8x72xf32>
    %cst_20 = arith.constant dense<0.000000e+00> : vector<8x576xf32>
    %106 = tpu.matmul %105, %104, %cst_20 {dimension_numbers = #tpu.dot_dimension_numbers<[1], [0], [0], [1], [0, 0, 1, 1], [], []>} : vector<8x72xf32>, vector<72x576xf32>, vector<8x576xf32> -> vector<8x576xf32>
    %c0_21 = arith.constant 0 : index
    %c0_22 = arith.constant 0 : index
    %107 = vector.load %arg10[%c0_21, %c0_22] : memref<8x1xf32, #tpu.memory_space<vmem>>, vector<8x1xf32>
    %108 = vector.broadcast %107 : vector<8x1xf32> to vector<8x576xf32>
    %109 = arith.addf %106, %108 : vector<8x576xf32>
    %c2 = arith.constant 2 : index
    %110 = memref.load %arg12[%c2] : memref<4xf32, #tpu.memory_space<smem>>
    %cst_23 = arith.constant 0.000000e+00 : f32
    %111 = vector.broadcast %cst_23 : f32 to vector<8x576xf32>
    %112 = arith.cmpf oge, %109, %111 : vector<8x576xf32>
    %113 = vector.broadcast %110 : f32 to vector<8x576xf32>
    %114 = arith.mulf %113, %109 : vector<8x576xf32>
    %115 = arith.select %112, %109, %114 : vector<8x576xi1>, vector<8x576xf32>
    %116 = vector.broadcast %3 : vector<1x576xf32> to vector<8x576xf32>
    %117 = arith.mulf %115, %116 : vector<8x576xf32>
    %118 = vector.extract_strided_slice %117 {offsets = [0, 551], sizes = [8, 25], strides = [1, 1]} : vector<8x576xf32> to vector<8x25xf32>
    %119 = vector.extract_strided_slice %117 {offsets = [0, 0], sizes = [8, 551], strides = [1, 1]} : vector<8x576xf32> to vector<8x551xf32>
    %120 = tpu.concatenate %118, %119 in 1 : vector<8x25xf32>, vector<8x551xf32> -> vector<8x576xf32>
    %121 = vector.extract_strided_slice %117 {offsets = [0, 552], sizes = [8, 24], strides = [1, 1]} : vector<8x576xf32> to vector<8x24xf32>
    %122 = vector.extract_strided_slice %117 {offsets = [0, 0], sizes = [8, 552], strides = [1, 1]} : vector<8x576xf32> to vector<8x552xf32>
    %123 = tpu.concatenate %121, %122 in 1 : vector<8x24xf32>, vector<8x552xf32> -> vector<8x576xf32>
    %124 = vector.extract_strided_slice %117 {offsets = [0, 553], sizes = [8, 23], strides = [1, 1]} : vector<8x576xf32> to vector<8x23xf32>
    %125 = vector.extract_strided_slice %117 {offsets = [0, 0], sizes = [8, 553], strides = [1, 1]} : vector<8x576xf32> to vector<8x553xf32>
    %126 = tpu.concatenate %124, %125 in 1 : vector<8x23xf32>, vector<8x553xf32> -> vector<8x576xf32>
    %127 = vector.extract_strided_slice %117 {offsets = [0, 575], sizes = [8, 1], strides = [1, 1]} : vector<8x576xf32> to vector<8x1xf32>
    %128 = vector.extract_strided_slice %117 {offsets = [0, 0], sizes = [8, 575], strides = [1, 1]} : vector<8x576xf32> to vector<8x575xf32>
    %129 = tpu.concatenate %127, %128 in 1 : vector<8x1xf32>, vector<8x575xf32> -> vector<8x576xf32>
    %130 = vector.extract_strided_slice %117 {offsets = [0, 1], sizes = [8, 575], strides = [1, 1]} : vector<8x576xf32> to vector<8x575xf32>
    %131 = vector.extract_strided_slice %117 {offsets = [0, 0], sizes = [8, 1], strides = [1, 1]} : vector<8x576xf32> to vector<8x1xf32>
    %132 = tpu.concatenate %130, %131 in 1 : vector<8x575xf32>, vector<8x1xf32> -> vector<8x576xf32>
    %133 = vector.extract_strided_slice %117 {offsets = [0, 23], sizes = [8, 553], strides = [1, 1]} : vector<8x576xf32> to vector<8x553xf32>
    %134 = vector.extract_strided_slice %117 {offsets = [0, 0], sizes = [8, 23], strides = [1, 1]} : vector<8x576xf32> to vector<8x23xf32>
    %135 = tpu.concatenate %133, %134 in 1 : vector<8x553xf32>, vector<8x23xf32> -> vector<8x576xf32>
    %136 = vector.extract_strided_slice %117 {offsets = [0, 24], sizes = [8, 552], strides = [1, 1]} : vector<8x576xf32> to vector<8x552xf32>
    %137 = vector.extract_strided_slice %117 {offsets = [0, 0], sizes = [8, 24], strides = [1, 1]} : vector<8x576xf32> to vector<8x24xf32>
    %138 = tpu.concatenate %136, %137 in 1 : vector<8x552xf32>, vector<8x24xf32> -> vector<8x576xf32>
    %139 = vector.extract_strided_slice %117 {offsets = [0, 25], sizes = [8, 551], strides = [1, 1]} : vector<8x576xf32> to vector<8x551xf32>
    %140 = vector.extract_strided_slice %117 {offsets = [0, 0], sizes = [8, 25], strides = [1, 1]} : vector<8x576xf32> to vector<8x25xf32>
    %141 = tpu.concatenate %139, %140 in 1 : vector<8x551xf32>, vector<8x25xf32> -> vector<8x576xf32>
    %142 = tpu.concatenate %120, %123, %126, %129, %117, %132, %135, %138, %141 in 0 : vector<8x576xf32>, vector<8x576xf32>, vector<8x576xf32>, vector<8x576xf32>, vector<8x576xf32>, vector<8x576xf32>, vector<8x576xf32>, vector<8x576xf32>, vector<8x576xf32> -> vector<72x576xf32>
    %c0_24 = arith.constant 0 : index
    %c0_25 = arith.constant 0 : index
    %143 = vector.load %arg7[%c0_24, %c0_25] : memref<4x72xf32, #tpu.memory_space<vmem>>, vector<4x72xf32>
    %cst_26 = arith.constant dense<0.000000e+00> : vector<4x576xf32>
    %144 = tpu.matmul %143, %142, %cst_26 {dimension_numbers = #tpu.dot_dimension_numbers<[1], [0], [0], [1], [0, 0, 1, 1], [], []>} : vector<4x72xf32>, vector<72x576xf32>, vector<4x576xf32> -> vector<4x576xf32>
    %c0_27 = arith.constant 0 : index
    %c0_28 = arith.constant 0 : index
    %145 = vector.load %arg11[%c0_27, %c0_28] : memref<4x1xf32, #tpu.memory_space<vmem>>, vector<4x1xf32>
    %146 = vector.broadcast %145 : vector<4x1xf32> to vector<4x576xf32>
    %147 = arith.addf %144, %146 : vector<4x576xf32>
    %c3 = arith.constant 3 : index
    %148 = memref.load %arg12[%c3] : memref<4xf32, #tpu.memory_space<smem>>
    %cst_29 = arith.constant 0.000000e+00 : f32
    %149 = vector.broadcast %cst_29 : f32 to vector<4x576xf32>
    %150 = arith.cmpf oge, %147, %149 : vector<4x576xf32>
    %151 = vector.broadcast %148 : f32 to vector<4x576xf32>
    %152 = arith.mulf %151, %147 : vector<4x576xf32>
    %153 = arith.select %150, %147, %152 : vector<4x576xi1>, vector<4x576xf32>
    %154 = vector.extract_strided_slice %153 {offsets = [0, 96], sizes = [4, 384], strides = [1, 1]} : vector<4x576xf32> to vector<4x384xf32>
    %c0_30 = arith.constant 0 : index
    %c0_31 = arith.constant 0 : index
    %c0_32 = arith.constant 0 : index
    %c0_33 = arith.constant 0 : index
    %155 = vector.load %arg13[%c0_30, %c0_31, %c0_32, %c0_33] : memref<1x1x4x384xf32, #tpu.memory_space<vmem>>, vector<1x1x4x384xf32>
    %156 = vector.shape_cast %155 : vector<1x1x4x384xf32> to vector<4x384xf32>
    %157 = vector.shape_cast %154 : vector<4x384xf32> to vector<1x1x4x384xf32>
    tpu.vector_store %arg13[%c0_30, %c0_31, %c0_32, %c0_33], %157 {strides = array<i32>} : memref<1x1x4x384xf32, #tpu.memory_space<vmem>>, vector<1x1x4x384xf32>,
    return
  }
  func.func @transform_0(%arg0: i32, %arg1: i32) -> (i32, i32, i32, i32) {
    %c0_i32 = arith.constant 0 : i32
    %c0_i32_0 = arith.constant 0 : i32
    %c0_i32_1 = arith.constant 0 : i32
    return %arg0, %arg1, %c0_i32, %c0_i32_0 : i32, i32, i32, i32
  }
  func.func @transform_1(%arg0: i32, %arg1: i32) -> (i32, i32, i32) {
    %c0_i32 = arith.constant 0 : i32
    %c0_i32_0 = arith.constant 0 : i32
    %c0_i32_1 = arith.constant 0 : i32
    return %arg1, %c0_i32, %c0_i32_0 : i32, i32, i32
  }
  func.func @transform_2(%arg0: i32, %arg1: i32) -> (i32, i32) {
    %c0_i32 = arith.constant 0 : i32
    %c0_i32_0 = arith.constant 0 : i32
    %c0_i32_1 = arith.constant 0 : i32
    return %c0_i32, %c0_i32_0 : i32, i32
  }
  func.func @transform_3(%arg0: i32, %arg1: i32) -> (i32, i32) {
    %c0_i32 = arith.constant 0 : i32
    %c0_i32_0 = arith.constant 0 : i32
    %c0_i32_1 = arith.constant 0 : i32
    return %c0_i32, %c0_i32_0 : i32, i32
  }
  func.func @transform_4(%arg0: i32, %arg1: i32) -> (i32, i32) {
    %c0_i32 = arith.constant 0 : i32
    %c0_i32_0 = arith.constant 0 : i32
    %c0_i32_1 = arith.constant 0 : i32
    return %c0_i32, %c0_i32_0 : i32, i32
  }
  func.func @transform_5(%arg0: i32, %arg1: i32) -> (i32, i32) {
    %c0_i32 = arith.constant 0 : i32
    %c0_i32_0 = arith.constant 0 : i32
    %c0_i32_1 = arith.constant 0 : i32
    return %c0_i32, %c0_i32_0 : i32, i32
  }
  func.func @transform_6(%arg0: i32, %arg1: i32) -> (i32, i32) {
    %c0_i32 = arith.constant 0 : i32
    %c0_i32_0 = arith.constant 0 : i32
    %c0_i32_1 = arith.constant 0 : i32
    return %c0_i32, %c0_i32_0 : i32, i32
  }
  func.func @transform_7(%arg0: i32, %arg1: i32) -> (i32, i32) {
    %c0_i32 = arith.constant 0 : i32
    %c0_i32_0 = arith.constant 0 : i32
    %c0_i32_1 = arith.constant 0 : i32
    return %c0_i32, %c0_i32_0 : i32, i32
  }
  func.func @transform_8(%arg0: i32, %arg1: i32) -> (i32, i32) {
    %c0_i32 = arith.constant 0 : i32
    %c0_i32_0 = arith.constant 0 : i32
    %c0_i32_1 = arith.constant 0 : i32
    return %c0_i32, %c0_i32_0 : i32, i32
  }
  func.func @transform_9(%arg0: i32, %arg1: i32) -> (i32, i32) {
    %c0_i32 = arith.constant 0 : i32
    %c0_i32_0 = arith.constant 0 : i32
    %c0_i32_1 = arith.constant 0 : i32
    return %c0_i32, %c0_i32_0 : i32, i32
  }
  func.func @transform_10(%arg0: i32, %arg1: i32) -> i32 {
    %c0_i32 = arith.constant 0 : i32
    %c0_i32_0 = arith.constant 0 : i32
    return %c0_i32 : i32
  }
  func.func @transform_11(%arg0: i32, %arg1: i32) -> (i32, i32, i32, i32) {
    %c0_i32 = arith.constant 0 : i32
    %c0_i32_0 = arith.constant 0 : i32
    %c0_i32_1 = arith.constant 0 : i32
    return %arg0, %arg1, %c0_i32, %c0_i32_0 : i32, i32, i32, i32
  }
}

</mosaic_0001>

<bundles_post_ra>
// kernel: rec_block_forward_pallas.1
= control target key start
LH: loop header
LB: loop body
LE: loop exit
PB: predicated region body
PF: predicated region fallthrough
CT: control target
= control target key end

     0   :  { %16 = vsyncpa [#allocation3], 0  ;;  %s2986_s17 = smov 0   ;;  %s2988_s18 = smov 0   ;;  %s3792_s0 = inlined_call_operand.vmem [shape: f32[2,1,8,576], index: 0, kind: input, shape index: {}]   ;;  %s3793_s1 = inlined_call_operand.vmem [shape: f32[1,1,576], index: 1, kind: input, shape index: {}]   ;;  %s3794_s2 = inlined_call_operand.vmem [shape: f32[8,72], index: 2, kind: input, shape index: {}]   ;;  %s3795_s3 = inlined_call_operand.vmem [shape: f32[8,72], index: 3, kind: input, shape index: {}]   ;;  %s3796_s4 = inlined_call_operand.vmem [shape: f32[8,72], index: 4, kind: input, shape index: {}]   ;;  %s3797_s5 = inlined_call_operand.vmem [shape: f32[4,72], index: 5, kind: input, shape index: {}]   ;;  %s3798_s6 = inlined_call_operand.vmem [shape: f32[8,1], index: 6, kind: input, shape index: {}]   ;;  %s3799_s7 = inlined_call_operand.vmem [shape: f32[8,1], index: 7, kind: input, shape index: {}]   ;;  %s3800_s8 = inlined_call_operand.vmem [shape: f32[8,1], index: 8, kind: input, shape index: {}]   ;;  %s3801_s9 = inlined_call_operand.vmem [shape: f32[4,1], index: 9, kind: input, shape index: {}]   ;;  %s3802_s10 = inlined_call_operand.vmem [shape: f32[4], index: 10, kind: input, shape index: {}]   ;;  %s3803_s11 = inlined_call_operand.vmem [shape: f32[2,1,4,384], index: 11, kind: output, shape index: {}]  }
   0x1   :  { %s2990_s19 = smov 0  }
   0x2 LB: > { %s2258_s20 = sadd.s32 4294967295, %s2902_s19   ;;  %s34_s21 = sadd.s32 1, %s2898_s18  ;;  %s2902_s19 = sphi %s2990_s19, %s22_s19   ;;  %s2898_s18 = sphi %s2988_s18, %s3841_s18   ;;  %s2894_s17 = sphi %s2986_s17, %s3840_s17  }
   0x3   : > { %p36_p0 = scmp.ge.s32.totalorder %s34_s21, 2  ;;  %p2260_p1 = scmp.ge.s32.totalorder %s2902_s19, 1 }
   0x4   : > { %p310_p2 = scmp.lt.s32.totalorder %s2902_s19, 3  ;;  %p3011_p4 = scmp.eq.s32.totalorder %s2258_s20, 0 }
   0x5   : > { %s3843_s21 = smov (%p36_p0, %s34_s21), 0  ;;  %s354_s26 = sshll.u32 %s3802_s10, 4  ;;  %s355_s26 = int_to_ptr.vmem [resolvable:$true] %s354_s26 }
   0x6   : > { %p3007_p3 = pnand %p2260_p1, %p310_p2  ;;  %s2861_s27 = scalar_lea.vmem %s355_s26, 16 }
   0x7   : > { %p2862_p7 = scmp.ne.s32.totalorder %s355_s26, %s2861_s27  ;;  %p2869_p11 = scmp.lt.s32.totalorder %s355_s26, %s355_s26 }
   0x8   : > { %p2547_p5 = pneg %p3007_p3  ;;  %p2870_p12 = scmp.lt.s32.totalorder %s2861_s27, %s2861_s27 }
   0xa   : > { %p2548_p6 = pnand %p3011_p4, %p2547_p5  ;;  %p2871_p13 = por %p2870_p12, %p2869_p11 }
   0xc   : > { %p2863_p8 = pneg %p2548_p6 }
   0xe   : > { %p2864_p9 = pnand %p2863_p8, %p2862_p7 }
  0x10   : > { %p2865_p10 = pneg %p2864_p9 }
  0x12   : > { %p2872_p0 = pnand %p2871_p13, %p2865_p10 }
  0x14   : > { %2875 = shalt.err (!%p2872_p0)
}
  0x15   : > { %s2904_s28 = smov [#allocation2]   ;;  %379 = sbr.rel (%p3007_p3) target bundleno = 1764 (0x6e4), region = 64 }
  0x16   : > { %2550 = dma.vmem_to_smem (!%p2548_p6), %s355_s26, 16, %s2904_s28, [#allocation3]  }
  0x1c   : > { %2889 = dma.done.wait (%p3011_p4), [#allocation3], 16  }
  0x1d   : > { %2891 = vsyncadd (%p3011_p4), [#allocation3], 4294967280 }
  0x1e   : > { %385 = sfence }
  0x1f   : > { %p432_p1 = scmp.lt.s32.totalorder %s2894_s17, 1  ;;  %s3815_s14 = smov 89   ;;  %v2916_v7 = vmov 0.0   ;;  %v2921_v10 = vmov 0   ;;  %v662_v11 = vld [vmem:[%s3798_s6] sm:$0xff]  ;;  %vm478_vm0 = vcmask 203776  }
  0x20   : > { %s2906_s15 = smov 25   ;;  %s3817_s16 = smov 88   ;;  %736 = vmatprep.mubr.f32.mxu0 %v2916_v7  ;;  %807 = vmatprep.mubr.f32.mxu1 %v2916_v7  ;;  %vm502_vm1 = vcmask 195584   ;;  %vm550_vm2 = vcmask 7168   ;;  %vm526_vm3 = vcmask 187392   ;;  %vm571_vm4 = vcmask 1039360  }
  0x21   : > { %s3845_s17 = smov (!%p432_p1, %s2894_s17), 1  ;;  %s2908_s20 = smov 24   ;;  %2659 = vset.pattern.permute.xlu0 %v2921_v10  ;;  %2790 = vset.pattern.permute.xlu1 %v2921_v10  ;;  %vm621_vm5 = vcmask 850944   ;;  %vm596_vm6 = vcmask 859136   ;;  %vm646_vm7 = vcmask 842752   ;;  %vm668_vm8 = vcmask 588800  }
  0x22   : > { %s2541_s29 = smul.u32 40, %s3845_s17  ;;  %s2909_s22 = smov 1   ;;  %vm2924_vm9 = vmmov 0   ;;  %vm584_vm10 = vcmask 515072   ;;  %vm609_vm11 = vcmask 334848   ;;  %vm3819_vm12 = vcmask 326656  }
  0x23   : > { %s3821_s23 = smov 23   ;;  %s3806_s24 = smov 65   ;;  %vm3812_vm13 = vcmask 318464  }
  0x24   : > { %s3036_s13 = scalar_lea.vmem %s3792_s0, %s2541_s29  ;;  %s3813_s25 = smov 87  }
  0x25   : > { %v3039_v0 = vld [vmem:[%s3036_s13 + $0x20] sm:$0xff]  ;;  %v3045_v2 = vld [vmem:[%s3036_s13 + $0x8] sm:$0xff]  ;;  %v3058_v4 = vld [vmem:[%s3036_s13 + $0x10] sm:$0xff]  ;;  %s2913_s26 = smov 127   ;;  %s2914_s27 = smov 104  }
  0x26   : > { %v3042_v1 = vld [vmem:[%s3036_s13] sm:$0xff]  ;;  %461 = vrot.lane.b32.xlu1 %v3039_v0, %s3815_s14  ;;  %v2619_v5 = vpack.i.bf16 %v3058_v4, %v3045_v2  ;;  %s3823_s28 = smov 105   ;;  %v3074_v6 = vld [vmem:[%s3036_s13 + $0x18] sm:$0xff]  ;;  %s2917_s29 = smov 103  }
  0x27   : > { %v2599_v3 = vpack.i.bf16 %v3045_v2, %v3042_v1  ;;  %v2639_v8 = vpack.i.bf16 %v3039_v0, %v3074_v6  ;;  %v2654_v9 = vpack.i.bf16 %v3074_v6, %v3039_v0  ;;  %s3808_s30 = smov 63   ;;  %s3804_s12 = smov 41  }
  0x28   : > { %s3820_s13 = smov 40  }
  0x29   : > { %2600 = vrot.lane.b32.xlu0 %v2599_v3, %s2906_s15 }
  0x2a   : > { %489 = vrot.lane.b32.xlu1 %v3039_v0, %s3817_s16 }
  0x2d   : > { %2605 = vrot.lane.b32.xlu0 %v2599_v3, %s2908_s20 }
  0x2e   : > { %2615 = vrot.lane.b32.xlu1 %v2599_v3, %s2909_s22 }
  0x31   : > { %2610 = vrot.lane.b32.xlu0 %v2599_v3, %s3821_s23 }
  0x32   : > { %537 = vrot.lane.b32.xlu1 %v3039_v0, %s3806_s24  ;;  %s3828_s24 = smov 65  }
  0x35   : > { %513 = vrot.lane.b32.xlu0 %v3039_v0, %s3813_s25 }
  0x36   : > { %561 = vrot.lane.b32.xlu1 %v3042_v1, %s2913_s26 }
  0x39   : > { %2620 = vrot.lane.b32.xlu0 %v2619_v5, %s2913_s26 }
  0x3a   : > { %2630 = vrot.lane.b32.xlu1 %v2619_v5, %s2914_s27 }
  0x3d   : > { %2625 = vrot.lane.b32.xlu0 %v2619_v5, %s3823_s28 }
  0x3e   : > { %611 = vrot.lane.b32.xlu1 %v3042_v1, %s2914_s27 }
  0x41   : > { %586 = vrot.lane.b32.xlu0 %v3042_v1, %s3823_s28 }
  0x42   : > { %640 = vrot.lane.b32.xlu1 %v3058_v4, %s2917_s29 }
  0x45   : > { %638 = vrot.lane.b32.xlu0 %v3045_v2, %s2917_s29 }
  0x46   : > { %2640 = vrot.lane.b32.xlu1 %v2639_v8, %s2908_s20 }
  0x49   : > { %2635 = vrot.lane.b32.xlu0 %v2639_v8, %s2906_s15 }
  0x4a   : > { %2645 = vrot.lane.b32.xlu1 %v2639_v8, %s3821_s23 }
  0x4d   : > { %636 = vrot.lane.b32.xlu0 %v3042_v1, %s2917_s29 }
  0x4e   : > { %472 = vrot.lane.b32.xlu1 %v3058_v4, %s2906_s15 }
  0x51   : > { %2650 = vrot.lane.b32.xlu0 %v2639_v8, %s2909_s22 }
  0x52   : > { %569 = vrot.lane.b32.xlu1 %v3039_v0, %s2913_s26 }
  0x55   : > { %496 = vrot.lane.b32.xlu0 %v3058_v4, %s2908_s20 }
  0x56   : > { %520 = vrot.lane.b32.xlu1 %v3058_v4, %s3821_s23 }
  0x59   : > { %581 = vrot.lane.b32.xlu0 %v3042_v1, %s3808_s30  ;;  %s3829_s30 = smov 41  }
  0x5a   : > { %2655 = vrot.lane.b32.xlu1 %v2654_v9, %s3823_s28 }
  0x5d   : > { %544 = vrot.lane.b32.xlu0 %v3058_v4, %s2909_s22 }
  0x5e   : > { %619 = vrot.lane.b32.xlu1 %v3039_v0, %s2914_s27 }
  0x61   : > { %606 = vrot.lane.b32.xlu0 %v3042_v1, %s3804_s12  ;;  %s3810_s12 = smov 39  }
  0x62   : > { %567 = vrot.lane.b32.xlu1 %v3074_v6, %s2913_s26 }
  0x65   : > { %631 = vrot.lane.b32.xlu0 %v3042_v1, %s3820_s13 }
  0x66   : > { %644 = vrot.lane.b32.xlu1 %v3039_v0, %s2917_s29 }
  0x69   : > { %617 = vrot.lane.b32.xlu0 %v3074_v6, %s2914_s27 }
  0x6a   : > { %642 = vrot.lane.b32.xlu1 %v3074_v6, %s2917_s29 }
  0x6d   : > { %656 = vrot.lane.b32.xlu0 %v3042_v1, %s3810_s12  ;;  %s884_s12 = sld [smem:[#allocation2]] }
  0x71   : > { %665 = vperm.xlu0 %2659, %v662_v11  }
  0x98   : > { %v462_v12 = vpop.permute.xlu1 %461 }
  0x9b   : > { %v3126_v13 = vpop.permute.xlu0 %2600 }
  0x9c   : > { %v2603_v14 = vunpack.i.h.bf16 %v3126_v13  ;;  %v2602_v15 = vunpack.i.l.bf16 %v3126_v13  ;;  %v490_v16 = vpop.permute.xlu1 %489 }
  0x9e   : > { %v479_v21 = vsel %vm478_vm0, %v2602_v15, %v2603_v14  ;;  %v488_v22 = vsel %vm478_vm0, %v462_v12, %v2602_v15 }
  0x9f   : > { %v3130_v17 = vpop.permute.xlu0 %2605 }
  0xa0   : > { %v2608_v18 = vunpack.i.h.bf16 %v3130_v17  ;;  %v2607_v19 = vunpack.i.l.bf16 %v3130_v17  ;;  %v3134_v20 = vpop.permute.xlu1 %2615 }
  0xa1   : > { %v2618_v23 = vunpack.i.h.bf16 %v3134_v20  ;;  %v2617_v24 = vunpack.i.l.bf16 %v3134_v20 }
  0xa2   : > { %v503_v25 = vsel %vm502_vm1, %v2607_v19, %v2608_v18  ;;  %v512_v26 = vsel %vm502_vm1, %v490_v16, %v2607_v19  ;;  %v3193_v19 = vld [vmem:[%s3794_s2] sm:$0xff] }
  0xa3   : > { %v3146_v27 = vpop.permute.xlu0 %2610  ;;  %v2377_v28 = vpack.c.bf16 %v503_v25, %v479_v21  ;;  %v2379_v29 = vpack.c.bf16 %v512_v26, %v488_v22  ;;  %v551_v32 = vsel %vm550_vm2, %v2617_v24, %v2618_v23 }
  0xa4   : > { %v2613_v30 = vunpack.i.h.bf16 %v3146_v27  ;;  %v2612_v31 = vunpack.i.l.bf16 %v3146_v27  ;;  %v538_v33 = vpop.permute.xlu1 %537 }
  0xa5   : > { %2378 = vmatprep.subr.bf16.mxu0 %v2377_v28  ;;  %v560_v37 = vsel %vm550_vm2, %v538_v33, %v2617_v24  ;;  %v2923_v28 = vmov 0.0|0.0  }
  0xa6   : > { %2380 = vmatpush1.bf16.msra.mxu0 %v2379_v29  ;;  %v527_v34 = vsel %vm526_vm3, %v2612_v31, %v2613_v30 }
  0xa7   : > { %v514_v35 = vpop.permute.xlu0 %513  ;;  %v2381_v36 = vpack.c.bf16 %v551_v32, %v527_v34 }
  0xa8   : > { %v536_v38 = vsel %vm526_vm3, %v514_v35, %v2612_v31  ;;  %v562_v40 = vpop.permute.xlu1 %561 }
  0xa9   : > { %v2383_v39 = vpack.c.bf16 %v560_v37, %v536_v38  ;;  %2382 = vmatprep.subr.bf16.mxu0 %v2381_v36 }
  0xab   : > { %v3158_v41 = vpop.permute.xlu0 %2620  ;;  %2384 = vmatpush1.bf16.msra.mxu0 %v2383_v39 }
  0xac   : > { %v2623_v42 = vunpack.i.h.bf16 %v3158_v41  ;;  %v2622_v43 = vunpack.i.l.bf16 %v3158_v41  ;;  %v3162_v44 = vpop.permute.xlu1 %2630 }
  0xad   : > { %v2633_v45 = vunpack.i.h.bf16 %v3162_v44  ;;  %v2632_v46 = vunpack.i.l.bf16 %v3162_v44 }
  0xae   : > { %v573_v47 = vsel %vm571_vm4, %v2622_v43, %v2623_v42  ;;  %v572_v48 = vsel %vm571_vm4, %v562_v40, %v2622_v43 }
  0xaf   : > { %v3170_v49 = vpop.permute.xlu0 %2625  ;;  %v2385_v50 = vpack.c.bf16 %v573_v47, %v3045_v2  ;;  %v2387_v51 = vpack.c.bf16 %v572_v48, %v3042_v1  ;;  %v623_v54 = vsel %vm621_vm5, %v2632_v46, %v2633_v45 }
  0xb0   : > { %v2628_v52 = vunpack.i.h.bf16 %v3170_v49  ;;  %v2627_v53 = vunpack.i.l.bf16 %v3170_v49  ;;  %v612_v55 = vpop.permute.xlu1 %611 }
  0xb1   : > { %2386 = vmatprep.subr.bf16.mxu0 %v2385_v50  ;;  %v622_v59 = vsel %vm621_vm5, %v612_v55, %v2632_v46 }
  0xb2   : > { %2388 = vmatpush1.bf16.msra.mxu0 %v2387_v51  ;;  %v598_v56 = vsel %vm596_vm6, %v2627_v53, %v2628_v52 }
  0xb3   : > { %v587_v57 = vpop.permute.xlu0 %586  ;;  %v2389_v58 = vpack.c.bf16 %v623_v54, %v598_v56 }
  0xb4   : > { %v597_v60 = vsel %vm596_vm6, %v587_v57, %v2627_v53  ;;  %v3184_v62 = vpop.permute.xlu1 %640 }
  0xb5   : > { %v2391_v61 = vpack.c.bf16 %v622_v59, %v597_v60  ;;  %2390 = vmatprep.subr.bf16.mxu0 %v2389_v58 }
  0xb7   : > { %v639_v63 = vpop.permute.xlu0 %638  ;;  %2392 = vmatpush1.bf16.msra.mxu0 %v2391_v61 }
  0xb8   : > { %v648_v1 = vsel %vm646_vm7, %v639_v63, %v3184_v62  ;;  %v2641_v2 = vpop.permute.xlu1 %2640 }
  0xb9   : > { %688 = vmatprep.subr.mxu0 %v648_v1  ;;  %v2643_v3 = vunpack.i.h.bf16 %v2641_v2  ;;  %v2642_v5 = vunpack.i.l.bf16 %v2641_v2 }
  0xbb   : > { %v2636_v8 = vpop.permute.xlu0 %2635  ;;  %v506_v12 = vsel %vm502_vm1, %v2642_v5, %v2643_v3 }
  0xbc   : > { %v2638_v9 = vunpack.i.h.bf16 %v2636_v8  ;;  %v2637_v10 = vunpack.i.l.bf16 %v2636_v8  ;;  %v2646_v11 = vpop.permute.xlu1 %2645 }
  0xbd   : > { %v2648_v25 = vunpack.i.h.bf16 %v2646_v11  ;;  %v2647_v26 = vunpack.i.l.bf16 %v2646_v11 }
  0xbe   : > { %v482_v15 = vsel %vm478_vm0, %v2637_v10, %v2638_v9 }
  0xbf   : > { %v637_v16 = vpop.permute.xlu0 %636  ;;  %v2410_v24 = vpack.c.bf16 %v506_v12, %v482_v15  ;;  %v530_v34 = vsel %vm526_vm3, %v2647_v26, %v2648_v25 }
  0xc0   : > { %v647_v21 = vsel %vm646_vm7, %v637_v16, %v639_v63  ;;  %v473_v22 = vpop.permute.xlu1 %472 }
  0xc1   : > { %689 = vmatpush1.msra.mxu0 %v647_v21  ;;  %v481_v38 = vsel %vm478_vm0, %v473_v22, %v2637_v10  ;;  %v480_v40 = vsel %vm478_vm0, %v2603_v14, %v473_v22  ;;  %v459_v21 = vld [vmem:[%s3793_s1] sm:$0x1f] }
  0xc2   : > { %2409 = vmatprep.subr.bf16.mxu0 %v2923_v28  ;;  %2268 = vmatmul.mubr.msk.f32.vlgmr.msra.gmra.mrb[0].mxu0 %vm668_vm8, %v3193_v19 }
  0xc3   : > { %v2651_v29 = vpop.permute.xlu0 %2650  ;;  %2411 = vmatpush3.bf16.msra.mxu0 %v2410_v24  ;;  %2332 = vmatprep.mubr.msk.f32.mxu0 %vm2924_vm9, %v2916_v7 }
  0xc4   : > { %v2653_v31 = vunpack.i.h.bf16 %v2651_v29  ;;  %v2652_v32 = vunpack.i.l.bf16 %v2651_v29  ;;  %2412 = vmatprep.subr.bf16.mxu0 %v2923_v28  ;;  %v570_v33 = vpop.permute.xlu1 %569 }
  0xc6   : > { %v554_v35 = vsel %vm550_vm2, %v2652_v32, %v2653_v31 }
  0xc7   : > { %v497_v36 = vpop.permute.xlu0 %496  ;;  %v2413_v37 = vpack.c.bf16 %v554_v35, %v530_v34 }
  0xc8   : > { %v505_v39 = vsel %vm502_vm1, %v497_v36, %v2642_v5  ;;  %v504_v43 = vsel %vm502_vm1, %v2608_v18, %v497_v36  ;;  %v521_v46 = vpop.permute.xlu1 %520 }
  0xc9   : > { %2414 = vmatpush3.bf16.msra.mxu0 %v2413_v37  ;;  %v2393_v47 = vpack.c.bf16 %v505_v39, %v481_v38  ;;  %v2395_v48 = vpack.c.bf16 %v504_v43, %v480_v40  ;;  %v528_v17 = vsel %vm526_vm3, %v2613_v30, %v521_v46  ;;  %v529_v18 = vsel %vm526_vm3, %v521_v46, %v2647_v26 }
  0xca   : > { %2415 = vmatprep.subr.bf16.mxu0 %v2923_v28  ;;  %v890_v26 = vstv %s884_s12  ;;  %s3827_s12 = smov 63  }
  0xcb   : > { %v582_v50 = vpop.permute.xlu0 %581  ;;  %2394 = vmatprep.subr.bf16.mxu1 %v2393_v47 }
  0xcc   : > { %v585_v51 = vsel %vm584_vm10, %v570_v33, %v582_v50  ;;  %2396 = vmatpush1.bf16.msra.mxu1 %v2395_v48  ;;  %v2656_v53 = vpop.permute.xlu1 %2655 }
  0xcd   : > { %v2416_v13 = vpack.c.bf16 %v585_v51, %v3039_v0  ;;  %v2657_v30 = vunpack.i.l.bf16 %v2656_v53  ;;  %v2658_v63 = vunpack.i.h.bf16 %v2656_v53 }
  0xcf   : > { %v545_v14 = vpop.permute.xlu0 %544  ;;  %2417 = vmatpush3.bf16.msra.mxu0 %v2416_v13 }
  0xd0   : > { %v552_v54 = vsel %vm550_vm2, %v2618_v23, %v545_v14  ;;  %v553_v55 = vsel %vm550_vm2, %v545_v14, %v2652_v32  ;;  %2418 = vmatprep.subr.bf16.mxu0 %v2923_v28  ;;  %v620_v56 = vpop.permute.xlu1 %619 }
  0xd1   : > { %v2397_v57 = vpack.c.bf16 %v553_v55, %v529_v18  ;;  %v2399_v0 = vpack.c.bf16 %v552_v54, %v528_v17 }
  0xd3   : > { %v607_v58 = vpop.permute.xlu0 %606  ;;  %2398 = vmatprep.subr.bf16.mxu1 %v2397_v57 }
  0xd4   : > { %2400 = vmatpush1.bf16.msra.mxu1 %v2399_v0  ;;  %v568_v27 = vpop.permute.xlu1 %567  ;;  %v610_v1 = vsel %vm609_vm11, %v2657_v30, %v607_v58 }
  0xd5   : > { %v574_v20 = vsel %vm571_vm4, %v2623_v42, %v568_v27  ;;  %v575_v23 = vsel %vm571_vm4, %v568_v27, %v570_v33 }
  0xd6   : > { %v2401_v60 = vpack.c.bf16 %v575_v23, %v3074_v6  ;;  %v2403_v61 = vpack.c.bf16 %v574_v20, %v3058_v4  ;;  %v600_v6 = vsel %vm596_vm6, %v2658_v63, %v2657_v30  ;;  %v599_v4 = vsel %vm596_vm6, %v2628_v52, %v2658_v63  ;;  %v1122_v63 = vld [vmem:[%s3799_s7] sm:$0xff] }
  0xd7   : > { %v632_v59 = vpop.permute.xlu0 %631  ;;  %v902_v52 = vlaneseq }
  0xd8   : > { %v635_v2 = vsel %vm3819_vm12, %v620_v56, %v632_v59  ;;  %v645_v5 = vpop.permute.xlu1 %644  ;;  %2402 = vmatprep.subr.bf16.mxu1 %v2401_v60 }
  0xd9   : > { %v2419_v3 = vpack.c.bf16 %v635_v2, %v610_v1  ;;  %2404 = vmatpush1.bf16.msra.mxu1 %v2403_v61  ;;  %v903_v15 = vshrl.u32 %v902_v52, 7 }
  0xdb   : > { %v618_v8 = vpop.permute.xlu0 %617  ;;  %2420 = vmatpush3.bf16.msra.mxu0 %v2419_v3  ;;  %v916_v16 = vsub.s32 3, %v903_v15  ;;  %v908_v37 = vsub.s32 1, %v903_v15  ;;  %v912_v38 = vsub.s32 2, %v903_v15  ;;  %v920_v58 = vsub.s32 4, %v903_v15 }
  0xdc   : > { %v624_v41 = vsel %vm621_vm5, %v2633_v45, %v618_v8  ;;  %v625_v42 = vsel %vm621_vm5, %v618_v8, %v620_v56  ;;  %2330 = vmatprep.subr.mxu0 %v2916_v7  ;;  %v643_v9 = vpop.permute.xlu1 %642 }
  0xdd   : > { %v2405_v10 = vpack.c.bf16 %v625_v42, %v600_v6  ;;  %v2407_v11 = vpack.c.bf16 %v624_v41, %v599_v4  ;;  %v650_v45 = vsel %vm646_vm7, %v643_v9, %v645_v5  ;;  %v649_v49 = vsel %vm646_vm7, %v3184_v62, %v643_v9 }
  0xde   : > { %v3254_v22 = vrot.slane %v459_v21, %v916_v16  ;;  %v904_v62 = vsub.s32 0, %v903_v15  ;;  %v3269_v48 = vrot.slane %v459_v21, %v908_v37  ;;  %v3271_v50 = vrot.slane %v459_v21, %v912_v38 }
  0xdf   : > { %v657_v12 = vpop.permute.xlu0 %656  ;;  %2406 = vmatprep.subr.bf16.mxu1 %v2405_v10  ;;  %v3294_v30 = vrot.slane %v459_v21, %v920_v58 }
  0xe0   : > { %v660_v44 = vsel %vm3812_vm13, %v645_v5, %v657_v12  ;;  %2408 = vmatpush1.bf16.msra.mxu1 %v2407_v11  ;;  %v3256_v32 = vrot.slane %v459_v21, %v904_v62 }
  0xe1   : > { %759 = vmatprep.subr.mxu1 %v650_v45  ;;  %2331 = vmatpush3.msra.mxu0 %v660_v44 }
  0xe2   : > { %2333 = vmatmul.mubr.msk.f32.vlgmr.msra.gmra.mrb[2].mxu0 %vm668_vm8, %v3193_v19 }
  0xe3   : > { %1266 = vmatprep.mubr.f32.mxu0 %v2916_v7 }
  0xe4   : > { %760 = vmatpush1.msra.mxu1 %v649_v49 }
  0xe5   : > { %2269 = vmatmul.mubr.msk.f32.vlgmr.msra.gmra.mrb[0].mxu1 %vm668_vm8, %v3193_v19 }
  0xe6   : > { %1195 = vmatprep.mubr.f32.mxu1 %v2916_v7 }
  0xf0   : > { %v666_v24 = vpop.permute.xlu0 %665 }
 0x195   : > { %v738_v25 = vpop.f32.mrb[0].mxu0 }
 0x196   : > { %v739_v29 = vadd.f32 %v738_v25, %v666_v24  ;;  %v740_v31 = vpop.f32.mrb[1].mxu0 }
 0x197   : > { %v741_v35 = vadd.f32 %v740_v31, %v666_v24 }
 0x198   : > { %vm885_vm14 = vcmp.ge.f32.partialorder %v739_v29, 0.0  ;;  %v891_v19 = vmul.f32 %v890_v26, %v739_v29 }
 0x199   : > { %v892_v40 = vmul.f32 %v890_v26, %v741_v35  ;;  %vm886_vm15 = vcmp.ge.f32.partialorder %v741_v35, 0.0 }
 0x19a   : > { %v896_v33 = vsel %vm885_vm14, %v739_v29, %v891_v19 }
 0x19b   : > { %v3259_v34 = vmul.f32 %v3256_v32, %v896_v33  ;;  %v897_v13 = vsel %vm886_vm15, %v741_v35, %v892_v40  ;;  %vm3831_vm15 = vcmask 318464  }
 0x19c   : > { %v3274_v18 = vmul.f32 %v3269_v48, %v897_v13 }
 0x19d   : > { %1052 = vrot.lane.b32.xlu0 %v3259_v34, %s3823_s28  ;;  %1029 = vrot.lane.b32.xlu1 %v3259_v34, %s2913_s26 }
 0x19e   : > { %v2670_v56 = vpack.i.bf16 %v3274_v18, %v3259_v34 }
 0x1a1   : > { %1098 = vrot.lane.b32.xlu0 %v3259_v34, %s2917_s29  ;;  %1075 = vrot.lane.b32.xlu1 %v3259_v34, %s2914_s27 }
 0x1b5   : > { %v880_v36 = vpop.f32.mrb[2].mxu0 }
 0x1b6   : > { %v2334_v39 = vpop.f32.mrb[3].mxu0  ;;  %v881_v0 = vadd.f32 %v880_v36, %v666_v24 }
 0x1b8   : > { %v809_v43 = vpop.f32.mrb[0].mxu1  ;;  %v895_v27 = vmul.f32 %v890_v26, %v881_v0 }
 0x1b9   : > { %v810_v46 = vadd.f32 %v809_v43, %v666_v24  ;;  %v811_v47 = vpop.f32.mrb[1].mxu1 }
 0x1ba   : > { %v812_v51 = vadd.f32 %v811_v47, %v666_v24 }
 0x1bb   : > { %vm887_vm14 = vcmp.ge.f32.partialorder %v810_v46, 0.0  ;;  %v893_v53 = vmul.f32 %v890_v26, %v810_v46 }
 0x1bc   : > { %vm888_vm13 = vcmp.ge.f32.partialorder %v812_v51, 0.0  ;;  %v894_v14 = vmul.f32 %v890_v26, %v812_v51 }
 0x1bd   : > { %v898_v17 = vsel %vm887_vm14, %v810_v46, %v893_v53 }
 0x1be   : > { %v3277_v54 = vmul.f32 %v3271_v50, %v898_v17  ;;  %v899_v55 = vsel %vm888_vm13, %v812_v51, %v894_v14  ;;  %vm889_vm13 = vcmp.ge.f32.partialorder %v881_v0, 0.0 }
 0x1bf   : > { %v900_v20 = vsel %vm889_vm13, %v881_v0, %v895_v27  ;;  %v3314_v59 = vmul.f32 %v3254_v22, %v899_v55 }
 0x1c0   : > { %967 = vrot.lane.b32.xlu0 %v3277_v54, %s2908_s20  ;;  %1102 = vrot.lane.b32.xlu1 %v3277_v54, %s2917_s29  ;;  %v2680_v57 = vpack.i.bf16 %v3277_v54, %v3274_v18  ;;  %v3300_v23 = vmul.f32 %v3294_v30, %v900_v20 }
 0x1c2   : > { %v2695_v60 = vpack.i.bf16 %v3300_v23, %v3314_v59  ;;  %v2715_v61 = vpack.i.bf16 %v3314_v59, %v3300_v23 }
 0x1c4   : > { %2671 = vrot.lane.b32.xlu0 %v2670_v56, %s3821_s23  ;;  %944 = vrot.lane.b32.xlu1 %v3277_v54, %s2906_s15 }
 0x1c8   : > { %2681 = vrot.lane.b32.xlu0 %v2680_v57, %s2913_s26  ;;  %2661 = vrot.lane.b32.xlu1 %v2670_v56, %s2906_s15 }
 0x1cc   : > { %2686 = vrot.lane.b32.xlu0 %v2680_v57, %s3823_s28  ;;  %2666 = vrot.lane.b32.xlu1 %v2670_v56, %s2908_s20 }
 0x1d0   : > { %1100 = vrot.lane.b32.xlu0 %v3274_v18, %s2917_s29  ;;  %2676 = vrot.lane.b32.xlu1 %v2670_v56, %s2909_s22 }
 0x1d4   : > { %933 = vrot.lane.b32.xlu0 %v3300_v23, %s3815_s14  ;;  %2691 = vrot.lane.b32.xlu1 %v2680_v57, %s2914_s27  ;;  %s2274_s14 = sld [smem:[#allocation2 + $0x1]] }
 0x1d8   : > { %983 = vrot.lane.b32.xlu0 %v3300_v23, %s3813_s25  ;;  %960 = vrot.lane.b32.xlu1 %v3300_v23, %s3817_s16  ;;  %s3830_s25 = smov 39   ;;  %s3832_s16 = smov 88  }
 0x1dc   : > { %1048 = vrot.lane.b32.xlu0 %v3259_v34, %s3827_s12  ;;  %1006 = vrot.lane.b32.xlu1 %v3300_v23, %s3828_s24 }
 0x1e0   : > { %1013 = vrot.lane.b32.xlu0 %v3277_v54, %s2909_s22  ;;  %990 = vrot.lane.b32.xlu1 %v3277_v54, %s3821_s23 }
 0x1e4   : > { %2696 = vrot.lane.b32.xlu0 %v2695_v60, %s2906_s15  ;;  %2701 = vrot.lane.b32.xlu1 %v2695_v60, %s2908_s20 }
 0x1e8   : > { %2711 = vrot.lane.b32.xlu0 %v2695_v60, %s2909_s22  ;;  %2706 = vrot.lane.b32.xlu1 %v2695_v60, %s3821_s23 }
 0x1ec   : > { %1071 = vrot.lane.b32.xlu0 %v3259_v34, %s3829_s30  ;;  %1037 = vrot.lane.b32.xlu1 %v3300_v23, %s2913_s26 }
 0x1f0   : > { %1094 = vrot.lane.b32.xlu0 %v3259_v34, %s3820_s13  ;;  %2716 = vrot.lane.b32.xlu1 %v2715_v61, %s3823_s28  ;;  %s3834_s13 = smov 87  }
 0x1f4   : > { %1081 = vrot.lane.b32.xlu0 %v3314_v59, %s2914_s27  ;;  %1083 = vrot.lane.b32.xlu1 %v3300_v23, %s2914_s27 }
 0x1f8   : > { %1117 = vrot.lane.b32.xlu0 %v3259_v34, %s3830_s25  ;;  %1035 = vrot.lane.b32.xlu1 %v3314_v59, %s2913_s26 }
 0x1fc   : > { %1125 = vperm.xlu0 %2659, %v1122_v63   ;;  %1106 = vrot.lane.b32.xlu1 %v3300_v23, %s2917_s29 }
 0x200   : > { %1104 = vrot.lane.b32.xlu1 %v3314_v59, %s2917_s29 }
 0x20f   : > { %v1053_v1 = vpop.permute.xlu0 %1052  ;;  %v1030_v2 = vpop.permute.xlu1 %1029 }
 0x213   : > { %v3350_v3 = vpop.permute.xlu0 %1098  ;;  %v1076_v5 = vpop.permute.xlu1 %1075 }
 0x232   : > { %v3352_v8 = vpop.permute.xlu0 %967  ;;  %v3354_v41 = vpop.permute.xlu1 %1102 }
 0x236   : > { %v3356_v42 = vpop.permute.xlu0 %2671  ;;  %v3358_v6 = vpop.permute.xlu1 %944 }
 0x237   : > { %v2674_v31 = vunpack.i.h.bf16 %v3356_v42  ;;  %v2673_v19 = vunpack.i.l.bf16 %v3356_v42 }
 0x239   : > { %v996_v46 = vsel %vm526_vm3, %v2673_v19, %v2674_v31 }
 0x23a   : > { %v3360_v4 = vpop.permute.xlu0 %2681  ;;  %v3362_v9 = vpop.permute.xlu1 %2661 }
 0x23b   : > { %v2664_v10 = vunpack.i.h.bf16 %v3362_v9  ;;  %v2663_v11 = vunpack.i.l.bf16 %v3362_v9  ;;  %v2684_v33 = vunpack.i.h.bf16 %v3360_v4  ;;  %v2683_v35 = vunpack.i.l.bf16 %v3360_v4 }
 0x23d   : > { %v950_v52 = vsel %vm478_vm0, %v2663_v11, %v2664_v10  ;;  %v1040_v17 = vsel %vm571_vm4, %v2683_v35, %v2684_v33  ;;  %v1039_v27 = vsel %vm571_vm4, %v1030_v2, %v2683_v35 }
 0x23e   : > { %v3366_v12 = vpop.permute.xlu0 %2686  ;;  %v2667_v44 = vpop.permute.xlu1 %2666  ;;  %v2429_v20 = vpack.c.bf16 %v1040_v17, %v3274_v18  ;;  %v2431_v9 = vpack.c.bf16 %v1039_v27, %v3259_v34  ;;  %v951_v34 = vsel %vm478_vm0, %v2664_v10, %v3358_v6 }
 0x23f   : > { %v2669_v45 = vunpack.i.h.bf16 %v2667_v44  ;;  %v2668_v49 = vunpack.i.l.bf16 %v2667_v44  ;;  %v2689_v57 = vunpack.i.h.bf16 %v3366_v12  ;;  %v2688_v0 = vunpack.i.l.bf16 %v3366_v12 }
 0x241   : > { %v973_v15 = vsel %vm502_vm1, %v2668_v49, %v2669_v45  ;;  %v1062_v2 = vsel %vm596_vm6, %v1053_v1, %v2688_v0  ;;  %v974_v18 = vsel %vm502_vm1, %v2669_v45, %v3352_v8 }
 0x242   : > { %v3370_v16 = vpop.permute.xlu0 %1100  ;;  %v3372_v21 = vpop.permute.xlu1 %2676  ;;  %v2421_v24 = vpack.c.bf16 %v973_v15, %v950_v52 }
 0x243   : > { %v2679_v62 = vunpack.i.h.bf16 %v3372_v21  ;;  %v2678_v25 = vunpack.i.l.bf16 %v3372_v21  ;;  %v1108_v17 = vsel %vm646_vm7, %v3350_v3, %v3370_v16 }
 0x244   : > { %2422 = vmatprep.subr.bf16.mxu1 %v2421_v24 }
 0x245   : > { %v1019_v38 = vsel %vm550_vm2, %v2678_v25, %v2679_v62 }
 0x246   : > { %v934_v26 = vpop.permute.xlu0 %933  ;;  %v3376_v29 = vpop.permute.xlu1 %2691  ;;  %v2425_v47 = vpack.c.bf16 %v1019_v38, %v996_v46 }
 0x247   : > { %v959_v39 = vsel %vm478_vm0, %v934_v26, %v2663_v11  ;;  %v2694_v51 = vunpack.i.h.bf16 %v3376_v29  ;;  %v2693_v13 = vunpack.i.l.bf16 %v3376_v29  ;;  %v1063_v11 = vsel %vm596_vm6, %v2688_v0, %v2689_v57 }
 0x249   : > { %v1086_v63 = vsel %vm621_vm5, %v2693_v13, %v2694_v51  ;;  %v1085_v44 = vsel %vm621_vm5, %v1076_v5, %v2693_v13 }
 0x24a   : > { %v984_v36 = vpop.permute.xlu0 %983  ;;  %v961_v37 = vpop.permute.xlu1 %960  ;;  %v2435_v35 = vpack.c.bf16 %v1085_v44, %v1062_v2 }
 0x24b   : > { %v982_v40 = vsel %vm502_vm1, %v961_v37, %v2668_v49  ;;  %v1005_v55 = vsel %vm526_vm3, %v984_v36, %v2673_v19  ;;  %v2433_v49 = vpack.c.bf16 %v1086_v63, %v1063_v11  ;;  %v2439_v36 = vpack.c.bf16 %v974_v18, %v951_v34 }
 0x24c   : > { %v2423_v43 = vpack.c.bf16 %v982_v40, %v959_v39  ;;  %v1109_v40 = vsel %vm646_vm7, %v3370_v16, %v3354_v41 }
 0x24e   : > { %v3392_v53 = vpop.permute.xlu0 %1048  ;;  %v1007_v14 = vpop.permute.xlu1 %1006  ;;  %2424 = vmatpush1.bf16.msra.mxu1 %v2423_v43 }
 0x24f   : > { %v1028_v56 = vsel %vm550_vm2, %v1007_v14, %v2678_v25  ;;  %2426 = vmatprep.subr.bf16.mxu1 %v2425_v47  ;;  %v3434_v14 = vld [vmem:[%s3795_s3] sm:$0xff] }
 0x250   : > { %v2427_v58 = vpack.c.bf16 %v1028_v56, %v1005_v55 }
 0x252   : > { %v1014_v60 = vpop.permute.xlu0 %1013  ;;  %v991_v61 = vpop.permute.xlu1 %990  ;;  %2428 = vmatpush1.bf16.msra.mxu1 %v2427_v58 }
 0x253   : > { %2430 = vmatprep.subr.bf16.mxu1 %v2429_v20 }
 0x256   : > { %v2697_v52 = vpop.permute.xlu0 %2696  ;;  %v2702_v15 = vpop.permute.xlu1 %2701  ;;  %2432 = vmatpush1.bf16.msra.mxu1 %v2431_v9 }
 0x257   : > { %v2699_v24 = vunpack.i.h.bf16 %v2697_v52  ;;  %v2698_v25 = vunpack.i.l.bf16 %v2697_v52  ;;  %v2704_v26 = vunpack.i.h.bf16 %v2702_v15  ;;  %v2703_v19 = vunpack.i.l.bf16 %v2702_v15  ;;  %2434 = vmatprep.subr.bf16.mxu1 %v2433_v49 }
 0x259   : > { %v952_v5 = vsel %vm478_vm0, %v3358_v6, %v2698_v25  ;;  %v975_v1 = vsel %vm502_vm1, %v3352_v8, %v2703_v19  ;;  %v953_v45 = vsel %vm478_vm0, %v2698_v25, %v2699_v24  ;;  %v976_v37 = vsel %vm502_vm1, %v2703_v19, %v2704_v26 }
 0x25a   : > { %v2712_v38 = vpop.permute.xlu0 %2711  ;;  %v2707_v39 = vpop.permute.xlu1 %2706  ;;  %2436 = vmatpush1.bf16.msra.mxu1 %v2435_v35  ;;  %v2437_v10 = vpack.c.bf16 %v975_v1, %v952_v5  ;;  %v1020_v8 = vsel %vm550_vm2, %v2679_v62, %v1014_v60  ;;  %v997_v6 = vsel %vm526_vm3, %v2674_v31, %v991_v61  ;;  %v2454_v62 = vpack.c.bf16 %v976_v37, %v953_v45 }
 0x25b   : > { %v2714_v43 = vunpack.i.h.bf16 %v2712_v38  ;;  %v2713_v46 = vunpack.i.l.bf16 %v2712_v38  ;;  %v2709_v47 = vunpack.i.h.bf16 %v2707_v39  ;;  %v2708_v13 = vunpack.i.l.bf16 %v2707_v39  ;;  %1147 = vmatprep.subr.mxu1 %v1109_v40 }
 0x25c   : > { %2438 = vmatprep.subr.bf16.mxu0 %v2437_v10  ;;  %v2443_v0 = vpack.c.bf16 %v1020_v8, %v997_v6  ;;  %v1349_v10 = vstv %s2274_s14  ;;  %s3833_s14 = smov 89  }
 0x25d   : > { %2440 = vmatpush1.bf16.msra.mxu0 %v2439_v36  ;;  %v998_v55 = vsel %vm526_vm3, %v991_v61, %v2708_v13  ;;  %v1021_v21 = vsel %vm550_vm2, %v1014_v60, %v2713_v46  ;;  %v1022_v58 = vsel %vm550_vm2, %v2713_v46, %v2714_v43  ;;  %v999_v27 = vsel %vm526_vm3, %v2708_v13, %v2709_v47 }
 0x25e   : > { %v1072_v56 = vpop.permute.xlu0 %1071  ;;  %v1038_v42 = vpop.permute.xlu1 %1037  ;;  %1148 = vmatpush1.msra.mxu1 %v1108_v17  ;;  %v2441_v31 = vpack.c.bf16 %v1021_v21, %v998_v55  ;;  %v2457_v3 = vpack.c.bf16 %v1022_v58, %v999_v27 }
 0x25f   : > { %2271 = vmatmul.mubr.msk.f32.vlgmr.msra.gmra.mrb[2].mxu1 %vm668_vm8, %v3434_v14  ;;  %2453 = vmatprep.subr.bf16.mxu1 %v2923_v28  ;;  %v1051_v60 = vsel %vm584_vm10, %v1038_v42, %v3392_v53 }
 0x260   : > { %2442 = vmatprep.subr.bf16.mxu0 %v2441_v31  ;;  %2455 = vmatpush3.bf16.msra.mxu1 %v2454_v62  ;;  %v2460_v63 = vpack.c.bf16 %v1051_v60, %v3300_v23 }
 0x261   : > { %2444 = vmatpush1.bf16.msra.mxu0 %v2443_v0  ;;  %2456 = vmatprep.subr.bf16.mxu1 %v2923_v28 }
 0x262   : > { %v1095_v16 = vpop.permute.xlu0 %1094  ;;  %v2717_v20 = vpop.permute.xlu1 %2716  ;;  %2353 = vmatprep.mubr.msk.f32.mxu1 %vm2924_vm9, %v2916_v7 }
 0x263   : > { %v2718_v61 = vunpack.i.l.bf16 %v2717_v20  ;;  %v2719_v49 = vunpack.i.h.bf16 %v2717_v20 }
 0x264   : > { %2458 = vmatpush3.bf16.msra.mxu1 %v2457_v3 }
 0x265   : > { %2459 = vmatprep.subr.bf16.mxu1 %v2923_v28  ;;  %v1074_v2 = vsel %vm609_vm11, %v2718_v61, %v1072_v56  ;;  %v1065_v26 = vsel %vm596_vm6, %v2719_v49, %v2718_v61  ;;  %v1555_v61 = vld [vmem:[%s3800_s8] sm:$0xff] }
 0x266   : > { %v1084_v9 = vpop.permute.xlu1 %1083  ;;  %v1082_v44 = vpop.permute.xlu0 %1081 }
 0x267   : > { %v1097_v11 = vsel %vm3819_vm12, %v1084_v9, %v1095_v16  ;;  %v1088_v53 = vsel %vm621_vm5, %v1082_v44, %v1084_v9  ;;  %v1087_v19 = vsel %vm621_vm5, %v2694_v51, %v1082_v44 }
 0x268   : > { %2461 = vmatpush3.bf16.msra.mxu1 %v2460_v63  ;;  %v2463_v18 = vpack.c.bf16 %v1097_v11, %v1074_v2  ;;  %v2449_v34 = vpack.c.bf16 %v1088_v53, %v1065_v26 }
 0x269   : > { %2462 = vmatprep.subr.bf16.mxu1 %v2923_v28 }
 0x26a   : > { %v1036_v52 = vpop.permute.xlu1 %1035  ;;  %v1118_v35 = vpop.permute.xlu0 %1117 }
 0x26b   : > { %v1041_v15 = vsel %vm571_vm4, %v2684_v33, %v1036_v52  ;;  %v1042_v23 = vsel %vm571_vm4, %v1036_v52, %v1038_v42 }
 0x26c   : > { %v2445_v24 = vpack.c.bf16 %v1042_v23, %v3314_v59  ;;  %v2447_v25 = vpack.c.bf16 %v1041_v15, %v3277_v54  ;;  %2464 = vmatpush3.bf16.msra.mxu1 %v2463_v18  ;;  %v1064_v54 = vsel %vm596_vm6, %v2689_v57, %v2719_v49 }
 0x26d   : > { %2351 = vmatprep.subr.mxu1 %v2916_v7  ;;  %v2451_v59 = vpack.c.bf16 %v1087_v19, %v1064_v54 }
 0x26e   : > { %v1107_v4 = vpop.permute.xlu1 %1106  ;;  %2446 = vmatprep.subr.bf16.mxu0 %v2445_v24 }
 0x26f   : > { %v1120_v33 = vsel %vm3831_vm15, %v1107_v4, %v1118_v35  ;;  %2448 = vmatpush1.bf16.msra.mxu0 %v2447_v25 }
 0x270   : > { %2450 = vmatprep.subr.bf16.mxu0 %v2449_v34  ;;  %2352 = vmatpush3.msra.mxu1 %v1120_v33 }
 0x271   : > { %2354 = vmatmul.mubr.msk.f32.vlgmr.msra.gmra.mrb[4].mxu1 %vm668_vm8, %v3434_v14 }
 0x272   : > { %v1105_v29 = vpop.permute.xlu1 %1104  ;;  %1699 = vmatprep.mubr.f32.mxu1 %v2916_v7 }
 0x273   : > { %2452 = vmatpush1.bf16.msra.mxu0 %v2451_v59  ;;  %v1111_v51 = vsel %vm646_vm7, %v1105_v29, %v1107_v4  ;;  %v1110_v36 = vsel %vm646_vm7, %v3354_v41, %v1105_v29 }
 0x274   : > { %1218 = vmatprep.subr.mxu0 %v1111_v51 }
 0x277   : > { %1219 = vmatpush1.msra.mxu0 %v1110_v36 }
 0x278   : > { %2272 = vmatmul.mubr.msk.f32.vlgmr.msra.gmra.mrb[4].mxu0 %vm668_vm8, %v3434_v14 }
 0x279   : > { %1628 = vmatprep.mubr.f32.mxu0 %v2916_v7 }
 0x27b   : > { %v1126_v45 = vpop.permute.xlu0 %1125 }
 0x332   : > { %v1197_v12 = vpop.f32.mrb[2].mxu1 }
 0x333   : > { %v1199_v57 = vpop.f32.mrb[3].mxu1  ;;  %v1198_v40 = vadd.f32 %v1197_v12, %v1126_v45 }
 0x334   : > { %v1200_v43 = vadd.f32 %v1199_v57, %v1126_v45 }
 0x335   : > { %v1350_v8 = vmul.f32 %v1349_v10, %v1198_v40  ;;  %vm1344_vm15 = vcmp.ge.f32.partialorder %v1198_v40, 0.0 }
 0x336   : > { %v1351_v6 = vmul.f32 %v1349_v10, %v1200_v43  ;;  %vm1345_vm12 = vcmp.ge.f32.partialorder %v1200_v43, 0.0 }
 0x337   : > { %v1355_v62 = vsel %vm1344_vm15, %v1198_v40, %v1350_v8 }
 0x338   : > { %v1356_v56 = vsel %vm1345_vm12, %v1200_v43, %v1351_v6  ;;  %v3494_v42 = vmul.f32 %v1355_v62, %v3256_v32 }
 0x339   : > { %v3497_v31 = vmul.f32 %v1356_v56, %v3269_v48 }
 0x33b   : > { %v2730_v0 = vpack.i.bf16 %v3497_v31, %v3494_v42 }
 0x344   : > { %v1339_v5 = vpop.f32.mrb[4].mxu1 }
 0x345   : > { %v2355_v1 = vpop.f32.mrb[5].mxu1  ;;  %v1340_v58 = vadd.f32 %v1339_v5, %v1126_v45 }
 0x347   : > { %v1354_v3 = vmul.f32 %v1349_v10, %v1340_v58  ;;  %vm1348_vm12 = vcmp.ge.f32.partialorder %v1340_v58, 0.0 }
 0x349   : > { %v1359_v16 = vsel %vm1348_vm12, %v1340_v58, %v1354_v3 }
 0x34a   : > { %v3517_v20 = vmul.f32 %v1359_v16, %v3294_v30 }
 0x34b   : > { %v1268_v37 = vpop.f32.mrb[4].mxu0 }
 0x34c   : > { %v1269_v38 = vadd.f32 %v1268_v37, %v1126_v45  ;;  %v1270_v39 = vpop.f32.mrb[5].mxu0 }
 0x34d   : > { %v1271_v46 = vadd.f32 %v1270_v39, %v1126_v45 }
 0x34e   : > { %vm1346_vm14 = vcmp.ge.f32.partialorder %v1269_v38, 0.0  ;;  %v1352_v41 = vmul.f32 %v1349_v10, %v1269_v38 }
 0x34f   : > { %vm1347_vm13 = vcmp.ge.f32.partialorder %v1271_v46, 0.0  ;;  %v1353_v47 = vmul.f32 %v1349_v10, %v1271_v46 }
 0x350   : > { %v1357_v13 = vsel %vm1346_vm14, %v1269_v38, %v1352_v41 }
 0x351   : > { %v3482_v14 = vmul.f32 %v1357_v13, %v3271_v50  ;;  %v1358_v17 = vsel %vm1347_vm13, %v1271_v46, %v1353_v47 }
 0x352   : > { %v3485_v55 = vmul.f32 %v1358_v17, %v3254_v22 }
 0x353   : > { %1535 = vrot.lane.b32.xlu0 %v3482_v14, %s2917_s29  ;;  %v2750_v27 = vpack.i.bf16 %v3482_v14, %v3497_v31 }
 0x354   : > { %v2720_v21 = vpack.i.bf16 %v3485_v55, %v3482_v14  ;;  %v2775_v60 = vpack.i.bf16 %v3517_v20, %v3485_v55 }
 0x356   : > { %2721 = vrot.lane.b32.xlu1 %v2720_v21, %s2906_s15 }
 0x357   : > { %2726 = vrot.lane.b32.xlu0 %v2720_v21, %s2908_s20 }
 0x35a   : > { %1485 = vrot.lane.b32.xlu1 %v3494_v42, %s3823_s28 }
 0x35b   : > { %1462 = vrot.lane.b32.xlu0 %v3494_v42, %s2913_s26 }
 0x35e   : > { %2731 = vrot.lane.b32.xlu1 %v2730_v0, %s2906_s15 }
 0x35f   : > { %1508 = vrot.lane.b32.xlu0 %v3494_v42, %s2914_s27 }
 0x362   : > { %2741 = vrot.lane.b32.xlu1 %v2730_v0, %s3821_s23 }
 0x363   : > { %2736 = vrot.lane.b32.xlu0 %v2730_v0, %s2908_s20 }
 0x366   : > { %2751 = vrot.lane.b32.xlu1 %v2750_v27, %s2913_s26 }
 0x367   : > { %2746 = vrot.lane.b32.xlu0 %v2730_v0, %s2909_s22 }
 0x36a   : > { %2756 = vrot.lane.b32.xlu1 %v2750_v27, %s3823_s28 }
 0x36b   : > { %2761 = vrot.lane.b32.xlu0 %v2750_v27, %s2914_s27 }
 0x36e   : > { %1533 = vrot.lane.b32.xlu1 %v3497_v31, %s2917_s29 }
 0x36f   : > { %1393 = vrot.lane.b32.xlu0 %v3517_v20, %s3832_s16 }
 0x372   : > { %1366 = vrot.lane.b32.xlu1 %v3517_v20, %s3833_s14 }
 0x373   : > { %1439 = vrot.lane.b32.xlu0 %v3517_v20, %s3828_s24 }
 0x376   : > { %1416 = vrot.lane.b32.xlu1 %v3517_v20, %s3834_s13 }
 0x377   : > { %2766 = vrot.lane.b32.xlu0 %v2720_v21, %s3821_s23 }
 0x37a   : > { %1531 = vrot.lane.b32.xlu1 %v3494_v42, %s2917_s29 }
 0x37b   : > { %1404 = vrot.lane.b32.xlu0 %v3517_v20, %s2908_s20 }
 0x37e   : > { %2771 = vrot.lane.b32.xlu1 %v2720_v21, %s2909_s22 }
 0x37f   : > { %1427 = vrot.lane.b32.xlu0 %v3517_v20, %s3821_s23  ;;  %s3835_s23 = smov 40  }
 0x382   : > { %1481 = vrot.lane.b32.xlu1 %v3494_v42, %s3827_s12 }
 0x383   : > { %2776 = vrot.lane.b32.xlu0 %v2775_v60, %s2913_s26 }
 0x386   : > { %1381 = vrot.lane.b32.xlu1 %v3517_v20, %s2906_s15 }
 0x387   : > { %2781 = vrot.lane.b32.xlu0 %v2775_v60, %s3823_s28  ;;  %s2278_s28 = sld [smem:[#allocation2 + $0x2]] }
 0x38a   : > { %1450 = vrot.lane.b32.xlu1 %v3517_v20, %s2909_s22 }
 0x38b   : > { %1504 = vrot.lane.b32.xlu0 %v3494_v42, %s3829_s30  ;;  %s3838_s30 = smov 23  }
 0x38e   : > { %2786 = vrot.lane.b32.xlu1 %v2775_v60, %s2914_s27 }
 0x38f   : > { %1537 = vrot.lane.b32.xlu0 %v3485_v55, %s2917_s29 }
 0x392   : > { %1527 = vrot.lane.b32.xlu1 %v3494_v42, %s3835_s23 }
 0x393   : > { %1550 = vrot.lane.b32.xlu0 %v3494_v42, %s3830_s25 }
 0x396   : > { %1539 = vrot.lane.b32.xlu1 %v3517_v20, %s2917_s29 }
 0x39a   : > { %1558 = vperm.xlu1 %2790, %v1555_v61  }
 0x3c5   : > { %v3561_v63 = vpop.permute.xlu0 %1535 }
 0x3c8   : > { %v3563_v9 = vpop.permute.xlu1 %2721 }
 0x3c9   : > { %v2724_v11 = vunpack.i.h.bf16 %v3563_v9  ;;  %v2723_v44 = vunpack.i.l.bf16 %v3563_v9  ;;  %v3567_v49 = vpop.permute.xlu0 %2726 }
 0x3ca   : > { %v2729_v2 = vunpack.i.h.bf16 %v3567_v49  ;;  %v2728_v18 = vunpack.i.l.bf16 %v3567_v49 }
 0x3cb   : > { %v1385_v52 = vsel %vm478_vm0, %v2723_v44, %v2724_v11 }
 0x3cc   : > { %v3574_v53 = vpop.permute.xlu1 %1485  ;;  %v1408_v15 = vsel %vm502_vm1, %v2728_v18, %v2729_v2 }
 0x3cd   : > { %v1463_v23 = vpop.permute.xlu0 %1462  ;;  %v2481_v24 = vpack.c.bf16 %v1408_v15, %v1385_v52 }
 0x3cf   : > { %2482 = vmatprep.subr.bf16.mxu1 %v2481_v24 }
 0x3d0   : > { %v2732_v25 = vpop.permute.xlu1 %2731 }
 0x3d1   : > { %v1509_v26 = vpop.permute.xlu0 %1508  ;;  %v2734_v19 = vunpack.i.h.bf16 %v2732_v25  ;;  %v2733_v34 = vunpack.i.l.bf16 %v2732_v25 }
 0x3d3   : > { %v1384_v59 = vsel %vm478_vm0, %v2734_v19, %v2723_v44  ;;  %v1383_v36 = vsel %vm478_vm0, %v2733_v34, %v2734_v19 }
 0x3d4   : > { %v3579_v35 = vpop.permute.xlu1 %2741 }
 0x3d5   : > { %v2737_v4 = vpop.permute.xlu0 %2736  ;;  %v2744_v43 = vunpack.i.h.bf16 %v3579_v35  ;;  %v2743_v46 = vunpack.i.l.bf16 %v3579_v35 }
 0x3d6   : > { %v2739_v33 = vunpack.i.h.bf16 %v2737_v4  ;;  %v2738_v54 = vunpack.i.l.bf16 %v2737_v4 }
 0x3d7   : > { %v1429_v56 = vsel %vm526_vm3, %v2743_v46, %v2744_v43 }
 0x3d8   : > { %v1407_v29 = vsel %vm502_vm1, %v2739_v33, %v2728_v18  ;;  %v3583_v51 = vpop.permute.xlu1 %2751  ;;  %v1406_v12 = vsel %vm502_vm1, %v2738_v54, %v2739_v33 }
 0x3d9   : > { %v2483_v57 = vpack.c.bf16 %v1407_v29, %v1384_v59  ;;  %v2747_v5 = vpop.permute.xlu0 %2746  ;;  %v2465_v1 = vpack.c.bf16 %v1406_v12, %v1383_v36  ;;  %v2754_v41 = vunpack.i.h.bf16 %v3583_v51  ;;  %v2753_v47 = vunpack.i.l.bf16 %v3583_v51 }
 0x3da   : > { %v2749_v38 = vunpack.i.h.bf16 %v2747_v5  ;;  %v2748_v39 = vunpack.i.l.bf16 %v2747_v5 }
 0x3db   : > { %2466 = vmatprep.subr.bf16.mxu0 %v2465_v1  ;;  %2484 = vmatpush1.bf16.msra.mxu1 %v2483_v57  ;;  %v1473_v58 = vsel %vm571_vm4, %v2753_v47, %v2754_v41  ;;  %v1472_v24 = vsel %vm571_vm4, %v1463_v23, %v2753_v47 }
 0x3dc   : > { %v3587_v45 = vpop.permute.xlu1 %2756  ;;  %v1452_v8 = vsel %vm550_vm2, %v2748_v39, %v2749_v38  ;;  %v2473_v25 = vpack.c.bf16 %v1473_v58, %v3497_v31  ;;  %v2475_v33 = vpack.c.bf16 %v1472_v24, %v3494_v42 }
 0x3dd   : > { %v3589_v37 = vpop.permute.xlu0 %2761  ;;  %v2469_v0 = vpack.c.bf16 %v1452_v8, %v1429_v56  ;;  %v2759_v27 = vunpack.i.h.bf16 %v3587_v45  ;;  %v2758_v3 = vunpack.i.l.bf16 %v3587_v45 }
 0x3de   : > { %v2764_v16 = vunpack.i.h.bf16 %v3589_v37  ;;  %v2763_v60 = vunpack.i.l.bf16 %v3589_v37 }
 0x3e0   : > { %v3591_v40 = vpop.permute.xlu1 %1533  ;;  %v1519_v35 = vsel %vm621_vm5, %v2763_v60, %v2764_v16  ;;  %v1518_v23 = vsel %vm621_vm5, %v1509_v26, %v2763_v60 }
 0x3e1   : > { %v1394_v10 = vpop.permute.xlu0 %1393 }
 0x3e2   : > { %v1415_v6 = vsel %vm502_vm1, %v1394_v10, %v2738_v54  ;;  %v1495_v54 = vsel %vm596_vm6, %v3574_v53, %v2758_v3 }
 0x3e3   : > { %v2479_v5 = vpack.c.bf16 %v1518_v23, %v1495_v54 }
 0x3e4   : > { %v1367_v13 = vpop.permute.xlu1 %1366 }
 0x3e5   : > { %v1392_v17 = vsel %vm478_vm0, %v1367_v13, %v2733_v34  ;;  %v1440_v21 = vpop.permute.xlu0 %1439  ;;  %v1496_v34 = vsel %vm596_vm6, %v2758_v3, %v2759_v27 }
 0x3e6   : > { %v2467_v62 = vpack.c.bf16 %v1415_v6, %v1392_v17  ;;  %v1461_v44 = vsel %vm550_vm2, %v1440_v21, %v2748_v39  ;;  %v2477_v29 = vpack.c.bf16 %v1519_v35, %v1496_v34 }
 0x3e8   : > { %v1417_v61 = vpop.permute.xlu1 %1416  ;;  %2468 = vmatpush1.bf16.msra.mxu0 %v2467_v62 }
 0x3e9   : > { %v1438_v18 = vsel %vm526_vm3, %v1417_v61, %v2743_v46  ;;  %v2767_v52 = vpop.permute.xlu0 %2766  ;;  %2470 = vmatprep.subr.bf16.mxu0 %v2469_v0  ;;  %v1542_v46 = vsel %vm646_vm7, %v3591_v40, %v3561_v63 }
 0x3ea   : > { %v2471_v15 = vpack.c.bf16 %v1461_v44, %v1438_v18  ;;  %v2769_v31 = vunpack.i.h.bf16 %v2767_v52  ;;  %v2768_v59 = vunpack.i.l.bf16 %v2767_v52 }
 0x3ec   : > { %v1532_v19 = vpop.permute.xlu1 %1531  ;;  %2472 = vmatpush1.bf16.msra.mxu0 %v2471_v15  ;;  %v1430_v1 = vsel %vm526_vm3, %v2744_v43, %v2768_v59  ;;  %v1431_v42 = vsel %vm526_vm3, %v2768_v59, %v2769_v31 }
 0x3ed   : > { %v1405_v4 = vpop.permute.xlu0 %1404  ;;  %2474 = vmatprep.subr.bf16.mxu0 %v2473_v25  ;;  %v1541_v43 = vsel %vm646_vm7, %v1532_v19, %v3591_v40 }
 0x3ee   : > { %v1409_v56 = vsel %vm502_vm1, %v2729_v2, %v1405_v4 }
 0x3f0   : > { %v2772_v51 = vpop.permute.xlu1 %2771  ;;  %2476 = vmatpush1.bf16.msra.mxu0 %v2475_v33 }
 0x3f1   : > { %v2774_v36 = vunpack.i.h.bf16 %v2772_v51  ;;  %v2773_v12 = vunpack.i.l.bf16 %v2772_v51  ;;  %v1428_v57 = vpop.permute.xlu0 %1427  ;;  %2478 = vmatprep.subr.bf16.mxu0 %v2477_v29  ;;  %v1782_v51 = vstv %s2278_s28 }
 0x3f3   : > { %v1453_v39 = vsel %vm550_vm2, %v2749_v38, %v2773_v12  ;;  %v1454_v53 = vsel %vm550_vm2, %v2773_v12, %v2774_v36  ;;  %v1554_v38 = vld [vmem:[%s3796_s4] sm:$0xff] }
 0x3f4   : > { %v2487_v10 = vpack.c.bf16 %v1453_v39, %v1430_v1  ;;  %v1482_v26 = vpop.permute.xlu1 %1481  ;;  %2480 = vmatpush1.bf16.msra.mxu0 %v2479_v5  ;;  %v2485_v47 = vpack.c.bf16 %v1454_v53, %v1431_v42 }
 0x3f5   : > { %v2777_v13 = vpop.permute.xlu0 %2776  ;;  %1580 = vmatprep.subr.mxu0 %v1542_v46 }
 0x3f6   : > { %v2779_v8 = vunpack.i.h.bf16 %v2777_v13  ;;  %v2778_v6 = vunpack.i.l.bf16 %v2777_v13  ;;  %2486 = vmatprep.subr.bf16.mxu1 %v2485_v47 }
 0x3f7   : > { %2488 = vmatpush1.bf16.msra.mxu1 %v2487_v10 }
 0x3f8   : > { %v1474_v17 = vsel %vm571_vm4, %v2754_v41, %v2778_v6  ;;  %v1382_v21 = vpop.permute.xlu1 %1381  ;;  %1581 = vmatpush1.msra.mxu0 %v1541_v43  ;;  %v1475_v62 = vsel %vm571_vm4, %v2778_v6, %v2779_v8 }
 0x3f9   : > { %v2491_v0 = vpack.c.bf16 %v1474_v17, %v3482_v14  ;;  %v1386_v58 = vsel %vm478_vm0, %v2724_v11, %v1382_v21  ;;  %v2782_v3 = vpop.permute.xlu0 %2781  ;;  %2275 = vmatmul.mubr.msk.f32.vlgmr.msra.gmra.mrb[6].mxu0 %vm668_vm8, %v1554_v38  ;;  %v2489_v40 = vpack.c.bf16 %v1475_v62, %v3485_v55  ;;  %2497 = vmatprep.subr.bf16.mxu0 %v2923_v28 }
 0x3fa   : > { %v2498_v41 = vpack.c.bf16 %v1409_v56, %v1386_v58  ;;  %2374 = vmatprep.mubr.msk.f32.mxu0 %vm2924_vm9, %v2916_v7  ;;  %v1432_v14 = vsel %vm526_vm3, %v2769_v31, %v1428_v57  ;;  %v1484_v55 = vsel %vm584_vm10, %v2779_v8, %v1482_v26  ;;  %v2784_v60 = vunpack.i.h.bf16 %v2782_v3 }
 0x3fb   : > { %2490 = vmatprep.subr.bf16.mxu1 %v2489_v40  ;;  %v2783_v61 = vunpack.i.l.bf16 %v2782_v3  ;;  %v2504_v15 = vpack.c.bf16 %v1484_v55, %v3517_v20  ;;  %vm3836_vm9 = vcmask 326656   ;;  %vm3837_vm10 = vcmask 318464  }
 0x3fc   : > { %v1451_v49 = vpop.permute.xlu1 %1450  ;;  %2492 = vmatpush1.bf16.msra.mxu1 %v2491_v0  ;;  %2499 = vmatpush3.bf16.msra.mxu0 %v2498_v41 }
 0x3fd   : > { %v1455_v9 = vsel %vm550_vm2, %v2774_v36, %v1451_v49  ;;  %2500 = vmatprep.subr.bf16.mxu0 %v2923_v28  ;;  %v1505_v2 = vpop.permute.xlu0 %1504  ;;  %v1497_v24 = vsel %vm596_vm6, %v2759_v27, %v2783_v61  ;;  %v1498_v19 = vsel %vm596_vm6, %v2783_v61, %v2784_v60 }
 0x3fe   : > { %v2501_v11 = vpack.c.bf16 %v1455_v9, %v1432_v14  ;;  %v1507_v23 = vsel %vm609_vm11, %v2784_v60, %v1505_v2 }
 0x400   : > { %v2787_v44 = vpop.permute.xlu1 %2786  ;;  %2502 = vmatpush3.bf16.msra.mxu0 %v2501_v11 }
 0x401   : > { %v2789_v18 = vunpack.i.h.bf16 %v2787_v44  ;;  %v2788_v52 = vunpack.i.l.bf16 %v2787_v44  ;;  %2503 = vmatprep.subr.bf16.mxu0 %v2923_v28  ;;  %v1538_v4 = vpop.permute.xlu0 %1537 }
 0x403   : > { %v1520_v25 = vsel %vm621_vm5, %v2764_v16, %v2788_v52  ;;  %v1521_v34 = vsel %vm621_vm5, %v2788_v52, %v2789_v18  ;;  %v1543_v16 = vsel %vm646_vm7, %v3561_v63, %v1538_v4 }
 0x404   : > { %v2495_v35 = vpack.c.bf16 %v1520_v25, %v1497_v24  ;;  %v1528_v33 = vpop.permute.xlu1 %1527  ;;  %2505 = vmatpush3.bf16.msra.mxu0 %v2504_v15  ;;  %v2493_v54 = vpack.c.bf16 %v1521_v34, %v1498_v19 }
 0x405   : > { %v1530_v20 = vsel %vm3836_vm9, %v2789_v18, %v1528_v33  ;;  %2506 = vmatprep.subr.bf16.mxu0 %v2923_v28  ;;  %v1551_v31 = vpop.permute.xlu0 %1550 }
 0x406   : > { %v2507_v45 = vpack.c.bf16 %v1530_v20, %v1507_v23  ;;  %2494 = vmatprep.subr.bf16.mxu1 %v2493_v54 }
 0x407   : > { %2496 = vmatpush1.bf16.msra.mxu1 %v2495_v35 }
 0x408   : > { %v1540_v37 = vpop.permute.xlu1 %1539  ;;  %2508 = vmatpush3.bf16.msra.mxu0 %v2507_v45 }
 0x409   : > { %v1544_v27 = vsel %vm646_vm7, %v1538_v4, %v1540_v37  ;;  %2372 = vmatprep.subr.mxu0 %v2916_v7  ;;  %v1553_v59 = vsel %vm3837_vm10, %v1540_v37, %v1551_v31 }
 0x40a   : > { %1651 = vmatprep.subr.mxu1 %v1544_v27 }
 0x40b   : > { %1652 = vmatpush1.msra.mxu1 %v1543_v16 }
 0x40c   : > { %2276 = vmatmul.mubr.msk.f32.vlgmr.msra.gmra.mrb[6].mxu1 %vm668_vm8, %v1554_v38  ;;  %2373 = vmatpush3.msra.mxu0 %v1553_v59 }
 0x40d   : > { %2375 = vmatmul.mubr.msk.f32.vlgmr.msra.gmra.mrb[8].mxu0 %vm668_vm8, %v1554_v38  ;;  %2025 = vmatprep.mubr.f32.mxu1 %v2916_v7 }
 0x40e   : > { %2096 = vmatprep.mubr.f32.mxu0 %v2916_v7 }
 0x419   : > { %v1559_v28 = vpop.permute.xlu1 %1558 }
 0x4cc   : > { %v1630_v29 = vpop.f32.mrb[6].mxu0 }
 0x4cd   : > { %v1631_v36 = vadd.f32 %v1630_v29, %v1559_v28  ;;  %v1632_v63 = vpop.f32.mrb[7].mxu0 }
 0x4ce   : > { %v1633_v12 = vadd.f32 %v1632_v63, %v1559_v28 }
 0x4cf   : > { %vm1777_vm11 = vcmp.ge.f32.partialorder %v1631_v36, 0.0  ;;  %v1783_v57 = vmul.f32 %v1782_v51, %v1631_v36 }
 0x4d0   : > { %vm1778_vm14 = vcmp.ge.f32.partialorder %v1633_v12, 0.0  ;;  %v1784_v5 = vmul.f32 %v1782_v51, %v1633_v12 }
 0x4d1   : > { %v1788_v1 = vsel %vm1777_vm11, %v1631_v36, %v1783_v57 }
 0x4d2   : > { %v3673_v39 = vmul.f32 %v1788_v1, %v3256_v32  ;;  %v1789_v42 = vsel %vm1778_vm14, %v1633_v12, %v1784_v5 }
 0x4d3   : > { %v3676_v53 = vmul.f32 %v1789_v42, %v3269_v48 }
 0x4d4   : > { %1879 = vrot.lane.b32.xlu0 %v3673_v39, %s2913_s26 }
 0x4d5   : > { %v2811_v7 = vpack.i.bf16 %v3676_v53, %v3673_v39 }
 0x4d8   : > { %1915 = vrot.lane.b32.xlu0 %v3673_v39, %s2914_s27 }
 0x4dc   : > { %2812 = vrot.lane.b32.xlu0 %v2811_v7, %s2906_s15 }
 0x4df   : > { %v1701_v10 = vpop.f32.mrb[6].mxu1 }
 0x4e0   : > { %v1702_v26 = vadd.f32 %v1701_v10, %v1559_v28  ;;  %v1703_v46 = vpop.f32.mrb[7].mxu1  ;;  %v1772_v32 = vpop.f32.mrb[8].mxu0  ;;  %2817 = vrot.lane.b32.xlu0 %v2811_v7, %s2908_s20 }
 0x4e1   : > { %v1704_v47 = vadd.f32 %v1703_v46, %v1559_v28  ;;  %v2376_v48 = vpop.f32.mrb[9].mxu0  ;;  %v1773_v6 = vadd.f32 %v1772_v32, %v1559_v28 }
 0x4e2   : > { %vm1779_vm13 = vcmp.ge.f32.partialorder %v1702_v26, 0.0  ;;  %v1785_v13 = vmul.f32 %v1782_v51, %v1702_v26 }
 0x4e3   : > { %vm1780_vm15 = vcmp.ge.f32.partialorder %v1704_v47, 0.0  ;;  %v1786_v8 = vmul.f32 %v1782_v51, %v1704_v47  ;;  %v1787_v62 = vmul.f32 %v1782_v51, %v1773_v6  ;;  %vm1781_vm12 = vcmp.ge.f32.partialorder %v1773_v6, 0.0 }
 0x4e4   : > { %v1790_v38 = vsel %vm1779_vm13, %v1702_v26, %v1785_v13  ;;  %2822 = vrot.lane.b32.xlu0 %v2811_v7, %s3838_s30 }
 0x4e5   : > { %v3688_v43 = vmul.f32 %v1790_v38, %v3271_v50  ;;  %v1791_v17 = vsel %vm1780_vm15, %v1704_v47, %v1786_v8  ;;  %v1792_v58 = vsel %vm1781_vm12, %v1773_v6, %v1787_v62 }
 0x4e6   : > { %v3691_v21 = vmul.f32 %v1791_v17, %v3254_v22  ;;  %v1797_v50 = vmul.f32 %v1792_v58, %v3294_v30  ;;  %v1952_v30 = vld [vmem:[%s3801_s9] sm:$0xf] }
 0x4e7   : > { %v2831_v0 = vpack.i.bf16 %v3688_v43, %v3676_v53 }
 0x4e8   : > { %2827 = vrot.lane.b32.xlu0 %v2811_v7, %s2909_s22  ;;  %v2791_v56 = vpack.i.bf16 %v3691_v21, %v3688_v43  ;;  %v2851_v22 = vpack.i.bf16 %v1797_v50, %v3691_v21 }
 0x4ea   : > { %2792 = vrot.lane.b32.xlu1 %v2791_v56, %s2906_s15  ;;  %s3839_s15 = smov 105  }
 0x4ec   : > { %2832 = vrot.lane.b32.xlu0 %v2831_v0, %s2913_s26 }
 0x4ee   : > { %2797 = vrot.lane.b32.xlu1 %v2791_v56, %s2908_s20 }
 0x4f0   : > { %1799 = vrot.lane.b32.xlu0 %v1797_v50, %s3833_s14 }
 0x4f2   : > { %2802 = vrot.lane.b32.xlu1 %v2791_v56, %s3838_s30 }
 0x4f4   : > { %1841 = vrot.lane.b32.xlu0 %v1797_v50, %s3834_s13  ;;  %s2925_s13 = smov 32  }
 0x4f6   : > { %2807 = vrot.lane.b32.xlu1 %v2791_v56, %s2909_s22 }
 0x4f8   : > { %2852 = vrot.lane.b32.xlu0 %v2851_v22, %s3839_s15 }
 0x4fa   : > { %1897 = vrot.lane.b32.xlu1 %v3673_v39, %s3839_s15 }
 0x4fc   : > { %2857 = vrot.lane.b32.xlu0 %v2851_v22, %s2914_s27 }
 0x4fe   : > { %2837 = vrot.lane.b32.xlu1 %v2831_v0, %s3839_s15 }
 0x500   : > { %1937 = vrot.lane.b32.xlu0 %v3688_v43, %s2917_s29 }
 0x502   : > { %2842 = vrot.lane.b32.xlu1 %v2831_v0, %s2914_s27 }
 0x504   : > { %1941 = vrot.lane.b32.xlu0 %v1797_v50, %s2917_s29 }
 0x506   : > { %1822 = vrot.lane.b32.xlu1 %v1797_v50, %s3832_s16 }
 0x508   : > { %1955 = vperm.xlu0 %2659, %v1952_v30  }
 0x50a   : > { %1860 = vrot.lane.b32.xlu1 %v1797_v50, %s3828_s24  ;;  %s2542_s24 = smul.u32 12, %s3845_s17 }
 0x50c   : > { %s453_s12 = scalar_lea.vmem %s3803_s11, %s2542_s24 }
 0x50e   : > { %2847 = vrot.lane.b32.xlu1 %v2851_v22, %s2913_s26 }
 0x512   : > { %1935 = vrot.lane.b32.xlu1 %v3676_v53, %s2917_s29 }
 0x516   : > { %1939 = vrot.lane.b32.xlu1 %v3691_v21, %s2917_s29 }
 0x51a   : > { %1933 = vrot.lane.b32.xlu1 %v3673_v39, %s2917_s29  ;;  %s2281_s29 = sld [smem:[#allocation2 + $0x3]] }
 0x546   : > { %v3728_v3 = vpop.permute.xlu0 %1879 }
 0x54a   : > { %v3730_v40 = vpop.permute.xlu0 %1915 }
 0x54e   : > { %v2813_v41 = vpop.permute.xlu0 %2812 }
 0x54f   : > { %v2815_v49 = vunpack.i.h.bf16 %v2813_v41  ;;  %v2814_v14 = vunpack.i.l.bf16 %v2813_v41 }
 0x551   : > { %v1814_v55 = vsel %vm478_vm0, %v2814_v14, %v2815_v49 }
 0x552   : > { %v2818_v9 = vpop.permute.xlu0 %2817 }
 0x553   : > { %v2820_v11 = vunpack.i.h.bf16 %v2818_v9  ;;  %v2819_v2 = vunpack.i.l.bf16 %v2818_v9 }
 0x555   : > { %v1833_v60 = vsel %vm502_vm1, %v2819_v2, %v2820_v11 }
 0x556   : > { %v2823_v61 = vpop.permute.xlu0 %2822  ;;  %v2509_v44 = vpack.c.bf16 %v1833_v60, %v1814_v55 }
 0x557   : > { %v2825_v28 = vunpack.i.h.bf16 %v2823_v61  ;;  %v2824_v46 = vunpack.i.l.bf16 %v2823_v61 }
 0x558   : > { %2510 = vmatprep.subr.bf16.mxu1 %v2509_v44 }
 0x559   : > { %v1852_v38 = vsel %vm526_vm3, %v2824_v46, %v2825_v28 }
 0x55a   : > { %v2828_v18 = vpop.permute.xlu0 %2827 }
 0x55b   : > { %v2830_v29 = vunpack.i.h.bf16 %v2828_v18  ;;  %v2829_v32 = vunpack.i.l.bf16 %v2828_v18 }
 0x55c   : > { %v2793_v52 = vpop.permute.xlu1 %2792 }
 0x55d   : > { %v2795_v15 = vunpack.i.h.bf16 %v2793_v52  ;;  %v2794_v24 = vunpack.i.l.bf16 %v2793_v52  ;;  %v1871_v17 = vsel %vm550_vm2, %v2829_v32, %v2830_v29 }
 0x55e   : > { %v3734_v35 = vpop.permute.xlu0 %2832  ;;  %v2513_v50 = vpack.c.bf16 %v1871_v17, %v1852_v38 }
 0x55f   : > { %v1815_v4 = vsel %vm478_vm0, %v2815_v49, %v2794_v24  ;;  %v1816_v54 = vsel %vm478_vm0, %v2794_v24, %v2795_v15  ;;  %v2835_v13 = vunpack.i.h.bf16 %v3734_v35  ;;  %v2834_v8 = vunpack.i.l.bf16 %v3734_v35 }
 0x560   : > { %v2798_v25 = vpop.permute.xlu1 %2797 }
 0x561   : > { %v2800_v19 = vunpack.i.h.bf16 %v2798_v25  ;;  %v2799_v34 = vunpack.i.l.bf16 %v2798_v25  ;;  %v1890_v49 = vsel %vm571_vm4, %v2834_v8, %v2835_v13 }
 0x562   : > { %v1800_v31 = vpop.permute.xlu0 %1799  ;;  %v2517_v18 = vpack.c.bf16 %v1890_v49, %v3676_v53 }
 0x563   : > { %v1834_v33 = vsel %vm502_vm1, %v2820_v11, %v2799_v34  ;;  %v1835_v23 = vsel %vm502_vm1, %v2799_v34, %v2800_v19  ;;  %v1821_v62 = vsel %vm478_vm0, %v1800_v31, %v2814_v14 }
 0x564   : > { %v2527_v20 = vpack.c.bf16 %v1834_v33, %v1815_v4  ;;  %v2803_v45 = vpop.permute.xlu1 %2802  ;;  %v2525_v37 = vpack.c.bf16 %v1835_v23, %v1816_v54 }
 0x565   : > { %v2805_v27 = vunpack.i.h.bf16 %v2803_v45  ;;  %v2804_v16 = vunpack.i.l.bf16 %v2803_v45 }
 0x566   : > { %2526 = vmatprep.subr.bf16.mxu0 %v2525_v37  ;;  %v1842_v10 = vpop.permute.xlu0 %1841 }
 0x567   : > { %2528 = vmatpush1.bf16.msra.mxu0 %v2527_v20  ;;  %v1853_v63 = vsel %vm526_vm3, %v2825_v28, %v2804_v16  ;;  %v1854_v57 = vsel %vm526_vm3, %v2804_v16, %v2805_v27  ;;  %v1859_v9 = vsel %vm526_vm3, %v1842_v10, %v2824_v46 }
 0x568   : > { %v2808_v59 = vpop.permute.xlu1 %2807 }
 0x569   : > { %v2810_v51 = vunpack.i.h.bf16 %v2808_v59  ;;  %v2809_v36 = vunpack.i.l.bf16 %v2808_v59 }
 0x56a   : > { %v2853_v47 = vpop.permute.xlu0 %2852 }
 0x56b   : > { %v1872_v12 = vsel %vm550_vm2, %v2830_v29, %v2809_v36  ;;  %v1873_v5 = vsel %vm550_vm2, %v2809_v36, %v2810_v51  ;;  %v2855_v24 = vunpack.i.h.bf16 %v2853_v47  ;;  %v2854_v25 = vunpack.i.l.bf16 %v2853_v47 }
 0x56c   : > { %v2531_v1 = vpack.c.bf16 %v1872_v12, %v1853_v63  ;;  %v1898_v42 = vpop.permute.xlu1 %1897  ;;  %v2529_v7 = vpack.c.bf16 %v1873_v5, %v1854_v57  ;;  %v1951_v12 = vld [vmem:[%s3797_s5] sm:$0xf] }
 0x56d   : > { %v1910_v16 = vsel %vm596_vm6, %v2854_v25, %v2855_v24 }
 0x56e   : > { %2530 = vmatprep.subr.bf16.mxu0 %v2529_v7  ;;  %v2858_v0 = vpop.permute.xlu0 %2857  ;;  %v2108_v7 = vstv %s2281_s29 }
 0x56f   : > { %2532 = vmatpush1.bf16.msra.mxu0 %v2531_v1  ;;  %v2860_v11 = vunpack.i.h.bf16 %v2858_v0  ;;  %v2859_v60 = vunpack.i.l.bf16 %v2858_v0 }
 0x570   : > { %v2838_v26 = vpop.permute.xlu1 %2837 }
 0x571   : > { %v2840_v61 = vunpack.i.h.bf16 %v2838_v26  ;;  %v2839_v14 = vunpack.i.l.bf16 %v2838_v26  ;;  %v1928_v33 = vsel %vm621_vm5, %v2859_v60, %v2860_v11 }
 0x572   : > { %v1938_v20 = vpop.permute.xlu0 %1937  ;;  %v2537_v59 = vpack.c.bf16 %v1928_v33, %v1910_v16 }
 0x573   : > { %v1908_v4 = vsel %vm596_vm6, %v2839_v14, %v2840_v61  ;;  %v1909_v28 = vsel %vm596_vm6, %v2840_v61, %v2854_v25 }
 0x574   : > { %v2843_v48 = vpop.permute.xlu1 %2842 }
 0x575   : > { %v2845_v22 = vunpack.i.h.bf16 %v2843_v48  ;;  %v2844_v30 = vunpack.i.l.bf16 %v2843_v48 }
 0x577   : > { %v1926_v15 = vsel %vm621_vm5, %v2844_v30, %v2845_v22  ;;  %v1927_v31 = vsel %vm621_vm5, %v2845_v22, %v2859_v60 }
 0x578   : > { %v1823_v6 = vpop.permute.xlu1 %1822  ;;  %v2521_v54 = vpack.c.bf16 %v1926_v15, %v1908_v4  ;;  %v2539_v51 = vpack.c.bf16 %v1927_v31, %v1909_v28 }
 0x579   : > { %v1840_v56 = vsel %vm502_vm1, %v1823_v6, %v2819_v2  ;;  %v1889_v2 = vsel %vm571_vm4, %v3728_v3, %v2834_v8  ;;  %v1925_v3 = vsel %vm621_vm5, %v3730_v40, %v2844_v30  ;;  %vm2131_vm5 = vcmask 261120  }
 0x57a   : > { %v2511_v58 = vpack.c.bf16 %v1840_v56, %v1821_v62  ;;  %v2519_v35 = vpack.c.bf16 %v1889_v2, %v3673_v39  ;;  %v1907_v39 = vsel %vm596_vm6, %v1898_v42, %v2839_v14 }
 0x57b   : > { %v2523_v40 = vpack.c.bf16 %v1925_v3, %v1907_v39 }
 0x57c   : > { %v1861_v41 = vpop.permute.xlu1 %1860  ;;  %2512 = vmatpush1.bf16.msra.mxu1 %v2511_v58 }
 0x57d   : > { %v1878_v55 = vsel %vm550_vm2, %v1861_v41, %v2829_v32  ;;  %2514 = vmatprep.subr.bf16.mxu1 %v2513_v50 }
 0x57e   : > { %v2515_v44 = vpack.c.bf16 %v1878_v55, %v1859_v9 }
 0x580   : > { %v2848_v52 = vpop.permute.xlu1 %2847  ;;  %2516 = vmatpush1.bf16.msra.mxu1 %v2515_v44 }
 0x581   : > { %v2850_v19 = vunpack.i.h.bf16 %v2848_v52  ;;  %v2849_v34 = vunpack.i.l.bf16 %v2848_v52  ;;  %2518 = vmatprep.subr.bf16.mxu1 %v2517_v18 }
 0x583   : > { %v1891_v53 = vsel %vm571_vm4, %v2835_v13, %v2849_v34  ;;  %v1892_v23 = vsel %vm571_vm4, %v2849_v34, %v2850_v19  ;;  %vm2129_vm4 = vcmask 1043456  }
 0x584   : > { %v2535_v45 = vpack.c.bf16 %v1891_v53, %v3688_v43  ;;  %v1936_v37 = vpop.permute.xlu1 %1935  ;;  %2520 = vmatpush1.bf16.msra.mxu1 %v2519_v35  ;;  %v2533_v27 = vpack.c.bf16 %v1892_v23, %v3691_v21  ;;  %v1942_v21 = vpop.permute.xlu0 %1941 }
 0x585   : > { %2522 = vmatprep.subr.bf16.mxu1 %v2521_v54  ;;  %v1944_v43 = vsel %vm646_vm7, %v1936_v37, %v1938_v20 }
 0x586   : > { %2534 = vmatprep.subr.bf16.mxu0 %v2533_v27 }
 0x587   : > { %2536 = vmatpush1.bf16.msra.mxu0 %v2535_v45 }
 0x588   : > { %v1940_v29 = vpop.permute.xlu1 %1939  ;;  %2524 = vmatpush1.bf16.msra.mxu1 %v2523_v40  ;;  %2538 = vmatprep.subr.bf16.mxu0 %v2537_v59  ;;  %v1956_v1 = vpop.permute.xlu0 %1955 }
 0x589   : > { %1977 = vmatprep.subr.mxu1 %v1944_v43  ;;  %v1946_v36 = vsel %vm646_vm7, %v1940_v29, %v1942_v21  ;;  %v1945_v5 = vsel %vm646_vm7, %v1938_v20, %v1940_v29 }
 0x58b   : > { %2540 = vmatpush1.bf16.msra.mxu0 %v2539_v51 }
 0x58c   : > { %v1934_v63 = vpop.permute.xlu1 %1933  ;;  %2048 = vmatprep.subr.mxu0 %v1946_v36 }
 0x58d   : > { %v1943_v57 = vsel %vm646_vm7, %v1934_v63, %v1936_v37 }
 0x58e   : > { %1978 = vmatpush1.msra.mxu1 %v1943_v57 }
 0x58f   : > { %2279 = vmatmul.mubr.msk.f32.vlgmr.msra.gmra.mrb[8].mxu1 %vm668_vm8, %v1951_v12  ;;  %2049 = vmatpush1.msra.mxu0 %v1945_v5 }
 0x590   : > { %2280 = vmatmul.mubr.msk.f32.vlgmr.msra.gmra.mrb[10].mxu0 %vm668_vm8, %v1951_v12 }
 0x662   : > { %v2027_v42 = vpop.f32.mrb[8].mxu1 }
 0x663   : > { %v2028_v10 = vadd.f32 %v2027_v42, %v1956_v1  ;;  %v2029_v26 = vpop.f32.mrb[9].mxu1  ;;  %v2098_v46 = vpop.f32.mrb[10].mxu0 }
 0x664   : > { %v2030_v32 = vadd.f32 %v2029_v26, %v1956_v1  ;;  %v2099_v47 = vadd.f32 %v2098_v46, %v1956_v1  ;;  %v2100_v48 = vpop.f32.mrb[11].mxu0 }
 0x665   : > { %vm2104_vm0 = vcmp.ge.f32.partialorder %v2028_v10, 0.0  ;;  %v2109_v13 = vmul.f32 %v2108_v7, %v2028_v10  ;;  %v2101_v8 = vadd.f32 %v2100_v48, %v1956_v1 }
 0x666   : > { %vm2105_vm1 = vcmp.ge.f32.partialorder %v2030_v32, 0.0  ;;  %v2110_v6 = vmul.f32 %v2108_v7, %v2030_v32  ;;  %vm2106_vm2 = vcmp.ge.f32.partialorder %v2099_v47, 0.0  ;;  %v2111_v38 = vmul.f32 %v2108_v7, %v2099_v47 }
 0x667   : > { %v2113_v17 = vsel %vm2104_vm0, %v2028_v10, %v2109_v13  ;;  %vm2107_vm3 = vcmp.ge.f32.partialorder %v2101_v8, 0.0  ;;  %v2112_v62 = vmul.f32 %v2108_v7, %v2101_v8 }
 0x668   : > { %v2114_v56 = vsel %vm2105_vm1, %v2030_v32, %v2110_v6  ;;  %v2115_v0 = vsel %vm2106_vm2, %v2099_v47, %v2111_v38 }
 0x669   : > { %v2121_v58 = vcombine.low %v2113_v17, %v2114_v56  ;;  %v2116_v50 = vsel %vm2107_vm3, %v2101_v8, %v2112_v62 }
 0x66a   : > { %v2122_v22 = vcombine.low %v2115_v0, %v2116_v50 }
 0x66b   : > { %2123 = vrot.lane.b32.xlu1 %v2121_v58, %s2925_s13 }
 0x66c   : > { %2125 = vrot.lane.b32.xlu0 %v2122_v22, %s2925_s13 }
 0x6dd   : > { %v2124_v30 = vpop.permute.xlu1 %2123 }
 0x6de   : > { %v2127_v41 = vrot.slane %v2124_v30, 4  ;;  %v2126_v49 = vpop.permute.xlu0 %2125 }
 0x6df   : > { %v2128_v9 = vrot.slane %v2126_v49, 4 }
 0x6e1   : > { %v2130_v11 = vsel %vm2129_vm4, %v2127_v41, %v2128_v9  ;;  %v2133_v55 = vsel %vm2131_vm5, %v2126_v49, %v2128_v9 }
 0x6e2   : > { %v2132_v60 = vsel %vm2131_vm5, %v2124_v30, %v2130_v11  ;;  %2137 = vst [vmem:[%s453_s12 + $0x8] sm:$0xf] %v2133_v55 }
 0x6e3   : > { %2136 = vst [vmem:[%s453_s12] sm:$0xff] %v2132_v60 }
 0x6e4 PF: > { %s22_s19 = sadd.s32 1, %s2902_s19   ;;  %s3840_s17 = smov %s2898_s18 }
 0x6e5   : > { %p19_p2 = scmp.ge.s32.totalorder %s22_s19, 4   ;;  %s3841_s18 = smov %s3843_s21 }
 0x6e7   :  { %21 = sbr.rel (!%p19_p2) target bundleno = 2 (0x2), region = 102 }
 0x6ee   :  { %2167 = vsyncpa [#allocation3], 1 }
 0x6ef   :  { %2169 = vsyncpa [#allocation3 + $0x1], 1 }

</bundles_post_ra>
